<compile_context>
chip_gen: v7x
topology: tpu7x:2x2x1
jax: 0.10.0
libtpu: 0.0.40
codegen_flags: <defaults>
</compile_context>

<pallas_src>
import jax
import jax.numpy as jnp
import numpy as np
from jax.experimental import pallas as pl
from jax.experimental.pallas import tpu as pltpu

EXPANSION = 4

# Set to jnp.bfloat16 for the fast MXU path on v5e/v6e/v7x (2-4x matmul throughput);
# kept at float32 so results match the fp32 reference to tight tolerance.
MXU_INPUT_DTYPE = jnp.float32

# Working-set budget for the pipelined tiles (leaves headroom even on v7x's 64 MiB/core).
_VMEM_WORKSET_BUDGET = 24 * 1024 * 1024


# ----------------------------- Pallas kernel ------------------------------ #

def _make_kernel(has_affine, has_residual, collect_stats, m_total, tm):
    """Builds: o = [relu(x*scale+bias)] @ W [+ residual], optionally emitting
    per-channel sum / sum-of-squares of o (masked on the partial last block)."""
    needs_mask = collect_stats and (m_total % tm != 0)

    def kernel(*refs):
        it = iter(refs)
        if has_affine:
            scale_ref = next(it)
            bias_ref = next(it)
        x_ref = next(it)
        w_ref = next(it)
        res_ref = next(it) if has_residual else None
        o_ref = next(it)
        if collect_stats:
            sum_ref = next(it)
            sq_ref = next(it)

        a = x_ref[...]
        if has_affine:
            a = jnp.maximum(a * scale_ref[...] + bias_ref[...], 0.0)
        w = w_ref[...]
        if MXU_INPUT_DTYPE != jnp.float32:
            a = a.astype(MXU_INPUT_DTYPE)
            w = w.astype(MXU_INPUT_DTYPE)
        acc = jnp.dot(a, w, preferred_element_type=jnp.float32)
        if has_residual:
            acc = acc + res_ref[...]
        o_ref[...] = acc.astype(o_ref.dtype)

        if collect_stats:
            val = acc
            sq = acc * acc
            if needs_mask:
                rows = pl.program_id(0) * tm + jax.lax.broadcasted_iota(
                    jnp.int32, (tm, 1), 0)
                valid = rows < m_total
                val = jnp.where(valid, val, 0.0)
                sq = jnp.where(valid, sq, 0.0)
            sum_ref[...] = jnp.sum(val, axis=0, keepdims=True)[None]
            sq_ref[...] = jnp.sum(sq, axis=0, keepdims=True)[None]

    return kernel


def _round_up(v, m):
    return ((v + m - 1) // m) * m


def _choose_tm(M, K, N, has_residual):
    """M-tile: as large as the VMEM budget allows (these layers are bandwidth bound,
    fat tiles approach HBM roofline), multiple of 8, and >= 2 grid steps so v7x's two
    TensorCores both get work on the 'parallel' axis."""
    if M <= 8:
        return M
    fixed = 8 * K * N + 16 * K                              # dbl-buffered weight + scale/bias
    per_row = 8 * (K + N + (N if has_residual else 0))      # dbl-buffered x / out / residual rows
    tm = (_VMEM_WORKSET_BUDGET - fixed) // per_row
    tm = max(64, min(int(tm), 1024))
    tm = min(tm, _round_up(pl.cdiv(M, 2), 8))               # keep >= 2 grid steps (v7x megacore)
    return max(8, (tm // 8) * 8)


def fused_matmul(x, w, scale=None, bias=None, residual=None, collect_stats=False):
    """Pallas call: [relu(x*scale+bias)] @ w [+ residual]; x:(M,K), w:(K,N).
    If collect_stats, also returns (sum_c, sumsq_c) of the output over rows."""
    M, K = x.shape
    N = w.shape[1]
    has_affine = scale is not None
    has_residual = residual is not None
    tm = _choose_tm(M, K, N, has_residual)
    grid = pl.cdiv(M, tm)

    in_specs = []
    args = []
    if has_affine:
        in_specs += [pl.BlockSpec((1, K), lambda i: (0, 0)),
                     pl.BlockSpec((1, K), lambda i: (0, 0))]
        args += [scale.reshape(1, K).astype(jnp.float32),
                 bias.reshape(1, K).astype(jnp.float32)]
    in_specs += [pl.BlockSpec((tm, K), lambda i: (i, 0)),    # x tile
                 pl.BlockSpec((K, N), lambda i: (0, 0))]     # full weight, constant index
    args += [x, w]
    if has_residual:
        in_specs.append(pl.BlockSpec((tm, N), lambda i: (i, 0)))
        args.append(residual)

    out_shapes = [jax.ShapeDtypeStruct((M, N), jnp.float32)]
    out_specs = [pl.BlockSpec((tm, N), lambda i: (i, 0))]
    if collect_stats:
        out_shapes += [jax.ShapeDtypeStruct((grid, 1, N), jnp.float32)] * 2
        out_specs += [pl.BlockSpec((1, 1, N), lambda i: (i, 0, 0))] * 2

    kernel = _make_kernel(has_affine, has_residual, collect_stats, M, tm)

    # Explicit VMEM limit (v5e scoped default is only 16 MiB); keep below v7x's 64 MiB/core.
    # TODO(synk): for very large K*N (e.g. planes>=512 conv2) add a K grid axis with an fp32
    # accumulator instead of keeping the full weight VMEM-resident.
    est = 8 * K * N + 16 * K + 8 * tm * (K + N + (N if has_residual else 0)) + (1 << 20)
    vmem_limit = int(min(max(2 * est, 32 * 2**20), 48 * 2**20))

    outs = pl.pallas_call(
        kernel,
        out_shape=tuple(out_shapes) if collect_stats else out_shapes[0],
        grid=(grid,),
        in_specs=in_specs,
        out_specs=tuple(out_specs) if collect_stats else out_specs[0],
        compiler_params=pltpu.CompilerParams(
            dimension_semantics=("parallel",),
            vmem_limit_bytes=vmem_limit),
    )(*args)

    if collect_stats:
        out, psum, psq = outs
        return out, (jnp.sum(psum, axis=(0, 1)), jnp.sum(psq, axis=(0, 1)))
    return outs


# ------------------------------- glue (JAX) -------------------------------- #

def _bn_scale_bias(sum_c, sumsq_c, count, gamma, beta, eps=1e-5):
    """Training-mode BatchNorm2d folded to per-channel scale/bias from sum / sum-of-squares."""
    mean = sum_c / count
    var = jnp.maximum(sumsq_c / count - mean * mean, 0.0)  # biased variance
    scale = gamma / jnp.sqrt(var + eps)
    bias = beta - mean * scale
    return scale, bias


def im2col_3x3(x_nhwc, stride):
    """im2col for a 3x3 conv, pad=1, given stride.  Returns (N*Ho*Wo, 9*C)."""
    N, H, W, C = x_nhwc.shape
    Ho = (H + 2 - 3) // stride + 1
    Wo = (W + 2 - 3) // stride + 1
    xp = jnp.pad(x_nhwc, ((0, 0), (1, 1), (1, 1), (0, 0)))
    cols = []
    for kh in range(3):
        for kw in range(3):
            cols.append(xp[:, kh:kh + Ho * stride:stride,
                           kw:kw + Wo * stride:stride, :])
    cols = jnp.concatenate(cols, axis=-1)  # (N, Ho, Wo, 9*C), order (kh, kw, c)
    return cols.reshape(N * Ho * Wo, 9 * C), (N, Ho, Wo)


def preact_bottleneck_forward(x_nchw, params, stride):
    x = jnp.transpose(x_nchw, (0, 2, 3, 1)).astype(jnp.float32)  # NCHW -> NHWC
    N, H, W, Cin = x.shape
    planes = params["w1"].shape[1]
    cnt_in = N * H * W

    # bn1: single fused sum / sum-of-squares pass over the input
    s1, b1 = _bn_scale_bias(jnp.sum(x, axis=(0, 1, 2)),
                            jnp.sum(x * x, axis=(0, 1, 2)),
                            cnt_in, params["gamma1"], params["beta1"])
    x_flat = x.reshape(cnt_in, Cin)

    # conv1 (1x1): relu(bn1(x)) @ W1; the kernel also emits out1's channel stats for bn2
    out1_flat, (so1, qo1) = fused_matmul(x_flat, params["w1"], scale=s1, bias=b1,
                                         collect_stats=True)

    # shortcut: 1x1 stride-s conv on relu(bn1(x)) when shapes change, else identity on raw x
    if "ws" in params:
        xs = x[:, ::stride, ::stride, :]
        Hs, Ws = xs.shape[1], xs.shape[2]
        shortcut_flat = fused_matmul(xs.reshape(N * Hs * Ws, Cin), params["ws"],
                                     scale=s1, bias=b1)
    else:
        shortcut_flat = x_flat  # stride == 1 and Cin == EXPANSION*planes

    # bn2 scale/bias from the fused stats; relu applied before zero padding so pads stay 0
    s2, b2 = _bn_scale_bias(so1, qo1, cnt_in, params["gamma2"], params["beta2"])
    a2 = jnp.maximum(out1_flat.reshape(N, H, W, planes) * s2 + b2, 0.0)
    cols, (_, Ho, Wo) = im2col_3x3(a2, stride)
    # TODO(synk): fold the 3x3 window gather into the Pallas kernel (9 accumulating taps on a
    # VMEM-resident halo tile) to remove the 9x im2col materialization in HBM.
    out2_flat, (so2, qo2) = fused_matmul(cols, params["w2"], collect_stats=True)

    # bn3 + relu + conv3 (1x1) + residual add, fused in one kernel
    s3, b3 = _bn_scale_bias(so2, qo2, N * Ho * Wo, params["gamma3"], params["beta3"])
    out3_flat = fused_matmul(out2_flat, params["w3"], scale=s3, bias=b3,
                             residual=shortcut_flat)
    out3 = out3_flat.reshape(N, Ho, Wo, EXPANSION * planes)
    return jnp.transpose(out3, (0, 3, 1, 2))  # back to NCHW


# --------------------------- deterministic params --------------------------- #

def init_params(key, in_planes, planes, stride):
    ks = jax.random.split(key, 10)

    def conv_w(k, cin, cout, kh=1, kw=1):
        fan_in = cin * kh * kw
        return jax.random.normal(k, (cout, cin, kh, kw), jnp.float32) / jnp.sqrt(fan_in)

    w1 = conv_w(ks[0], in_planes, planes)                 # (planes, in_planes, 1, 1)
    w2 = conv_w(ks[1], planes, planes, 3, 3)              # (planes, planes, 3, 3)
    w3 = conv_w(ks[2], planes, EXPANSION * planes)        # (4p, planes, 1, 1)

    params = {
        "gamma1": 1.0 + 0.1 * jax.random.normal(ks[3], (in_planes,), jnp.float32),
        "beta1": 0.1 * jax.random.normal(ks[4], (in_planes,), jnp.float32),
        "gamma2": 1.0 + 0.1 * jax.random.normal(ks[5], (planes,), jnp.float32),
        "beta2": 0.1 * jax.random.normal(ks[6], (planes,), jnp.float32),
        "gamma3": 1.0 + 0.1 * jax.random.normal(ks[7], (planes,), jnp.float32),
        "beta3": 0.1 * jax.random.normal(ks[8], (planes,), jnp.float32),
        # matmul-layout weights
        "w1": jnp.transpose(w1[:, :, 0, 0], (1, 0)),                              # (Cin, planes)
        "w2": jnp.transpose(w2, (2, 3, 1, 0)).reshape(9 * planes, planes),        # (kh,kw,Cin) rows
        "w3": jnp.transpose(w3[:, :, 0, 0], (1, 0)),                              # (planes, 4p)
    }
    if stride != 1 or in_planes != EXPANSION * planes:
        ws = conv_w(ks[9], in_planes, EXPANSION * planes)
        params["ws"] = jnp.transpose(ws[:, :, 0, 0], (1, 0))                      # (Cin, 4p)
    return params


# ------------------------------ JAX reference ------------------------------- #

def reference_forward(x_nchw, params, stride, planes):
    x = jnp.transpose(x_nchw, (0, 2, 3, 1))
    dn = ("NHWC", "HWIO", "NHWC")

    def bn_relu(v, gamma, beta, eps=1e-5):
        mean = jnp.mean(v, axis=(0, 1, 2))
        var = jnp.mean(jnp.square(v - mean), axis=(0, 1, 2))
        return jnp.maximum((v - mean) / jnp.sqrt(var + eps) * gamma + beta, 0.0)

    a1 = bn_relu(x, params["gamma1"], params["beta1"])
    w1 = params["w1"].reshape(1, 1, *params["w1"].shape)
    out1 = jax.lax.conv_general_dilated(a1, w1, (1, 1), "VALID", dimension_numbers=dn)
    if "ws" in params:
        ws = params["ws"].reshape(1, 1, *params["ws"].shape)
        shortcut = jax.lax.conv_general_dilated(a1, ws, (stride, stride), "VALID",
                                                dimension_numbers=dn)
    else:
        shortcut = x
    a2 = bn_relu(out1, params["gamma2"], params["beta2"])
    w2 = params["w2"].reshape(3, 3, planes, planes)
    out2 = jax.lax.conv_general_dilated(a2, w2, (stride, stride),
                                        ((1, 1), (1, 1)), dimension_numbers=dn)
    a3 = bn_relu(out2, params["gamma3"], params["beta3"])
    w3 = params["w3"].reshape(1, 1, *params["w3"].shape)
    out3 = jax.lax.conv_general_dilated(a3, w3, (1, 1), "VALID", dimension_numbers=dn)
    return jnp.transpose(out3 + shortcut, (0, 3, 1, 2))


# ----------------------------------- main ----------------------------------- #

if __name__ == "__main__":
    key = jax.random.PRNGKey(0)
    k1, k2, k3, k4 = jax.random.split(key, 4)
    fwd = jax.jit(preact_bottleneck_forward, static_argnums=(2,))

    # config 1: stride-2 downsampling block (conv shortcut active)
    in_planes, planes, stride = 4, 4, 2
    N, H, W = 2, 16, 16
    x = jax.random.normal(k1, (N, in_planes, H, W), jnp.float32)
    params = init_params(k2, in_planes, planes, stride)
    out = jax.block_until_ready(fwd(x, params, stride))
    assert out.shape == (N, EXPANSION * planes, H // stride, W // stride), out.shape
    ref = reference_forward(x, params, stride, planes)
    np.testing.assert_allclose(np.asarray(out), np.asarray(ref), rtol=5e-4, atol=5e-4)

    # config 2: stride-1 block with identity shortcut (in_planes == 4*planes)
    in_planes2, planes2, stride2 = 16, 4, 1
    x2 = jax.random.normal(k3, (N, in_planes2, H, W), jnp.float32)
    params2 = init_params(k4, in_planes2, planes2, stride2)
    out2 = jax.block_until_ready(fwd(x2, params2, stride2))
    assert out2.shape == (N, EXPANSION * planes2, H, W), out2.shape
    ref2 = reference_forward(x2, params2, stride2, planes2)
    np.testing.assert_allclose(np.asarray(out2), np.asarray(ref2), rtol=5e-4, atol=5e-4)

    print("KERNEL_OK")
</pallas_src>

<mosaic_0001>
module attributes {stable_mosaic.version = 11 : i64} {
  func.func @kernel(%arg0: i32, %arg1: memref<1x4xf32, #tpu.memory_space<vmem>>, %arg2: memref<1x4xf32, #tpu.memory_space<vmem>>, %arg3: memref<256x4xf32, #tpu.memory_space<vmem>>, %arg4: memref<4x4xf32, #tpu.memory_space<vmem>>, %arg5: memref<256x4xf32, #tpu.memory_space<vmem>>, %arg6: memref<1x1x4xf32, #tpu.memory_space<vmem>>, %arg7: memref<1x1x4xf32, #tpu.memory_space<vmem>>) attributes {dimension_semantics = [#tpu.dimension_semantics<parallel>], iteration_bounds = array<i64: 2>, scalar_prefetch = 0 : i64, scratch_operands = 0 : i64, tpu.core_type = #tpu.core_type<tc>, window_params = [{pipeline_mode = #tpu.pipeline_mode<synchronous>, transform_indices = @transform_0, window_bounds = array<i64: 1, 4>}, {pipeline_mode = #tpu.pipeline_mode<synchronous>, transform_indices = @transform_1, window_bounds = array<i64: 1, 4>}, {transform_indices = @transform_2, window_bounds = array<i64: 256, 4>}, {pipeline_mode = #tpu.pipeline_mode<synchronous>, transform_indices = @transform_3, window_bounds = array<i64: 4, 4>}, {transform_indices = @transform_4, window_bounds = array<i64: 256, 4>}, {transform_indices = @transform_5, window_bounds = array<i64: 1, 1, 4>}, {transform_indices = @transform_6, window_bounds = array<i64: 1, 1, 4>}]} {
    %c0 = arith.constant 0 : index
    %c0_0 = arith.constant 0 : index
    %0 = vector.load %arg3[%c0, %c0_0] : memref<256x4xf32, #tpu.memory_space<vmem>>, vector<256x4xf32>
    %c0_1 = arith.constant 0 : index
    %c0_2 = arith.constant 0 : index
    %1 = vector.load %arg1[%c0_1, %c0_2] : memref<1x4xf32, #tpu.memory_space<vmem>>, vector<1x4xf32>
    %2 = vector.broadcast %1 : vector<1x4xf32> to vector<256x4xf32>
    %3 = arith.mulf %0, %2 : vector<256x4xf32>
    %c0_3 = arith.constant 0 : index
    %c0_4 = arith.constant 0 : index
    %4 = vector.load %arg2[%c0_3, %c0_4] : memref<1x4xf32, #tpu.memory_space<vmem>>, vector<1x4xf32>
    %5 = vector.broadcast %4 : vector<1x4xf32> to vector<256x4xf32>
    %6 = arith.addf %3, %5 : vector<256x4xf32>
    %cst = arith.constant 0.000000e+00 : f32
    %7 = vector.broadcast %cst : f32 to vector<256x4xf32>
    %8 = arith.maximumf %6, %7 : vector<256x4xf32>
    %c0_5 = arith.constant 0 : index
    %c0_6 = arith.constant 0 : index
    %9 = vector.load %arg4[%c0_5, %c0_6] : memref<4x4xf32, #tpu.memory_space<vmem>>, vector<4x4xf32>
    %cst_7 = arith.constant dense<0.000000e+00> : vector<256x4xf32>
    %10 = tpu.matmul %8, %9, %cst_7 {dimension_numbers = #tpu.dot_dimension_numbers<[1], [0], [0], [1], [0, 0, 1, 1], [], []>} : vector<256x4xf32>, vector<4x4xf32>, vector<256x4xf32> -> vector<256x4xf32>
    %c0_8 = arith.constant 0 : index
    %c0_9 = arith.constant 0 : index
    %11 = vector.load %arg5[%c0_8, %c0_9] : memref<256x4xf32, #tpu.memory_space<vmem>>, vector<256x4xf32>
    tpu.vector_store %arg5[%c0_8, %c0_9], %10 {strides = array<i32>} : memref<256x4xf32, #tpu.memory_space<vmem>>, vector<256x4xf32>,
    %12 = arith.mulf %10, %10 : vector<256x4xf32>
    %cst_10 = arith.constant dense<0.000000e+00> : vector<4xf32>
    %13 = vector.multi_reduction <add>, %10, %cst_10 [0] : vector<256x4xf32> to vector<4xf32>
    %14 = vector.shape_cast %13 : vector<4xf32> to vector<1x4xf32>
    %15 = vector.shape_cast %14 : vector<1x4xf32> to vector<1x1x4xf32>
    %c0_11 = arith.constant 0 : index
    %c0_12 = arith.constant 0 : index
    %c0_13 = arith.constant 0 : index
    %16 = vector.load %arg6[%c0_11, %c0_12, %c0_13] : memref<1x1x4xf32, #tpu.memory_space<vmem>>, vector<1x1x4xf32>
    tpu.vector_store %arg6[%c0_11, %c0_12, %c0_13], %15 {strides = array<i32>} : memref<1x1x4xf32, #tpu.memory_space<vmem>>, vector<1x1x4xf32>,
    %cst_14 = arith.constant dense<0.000000e+00> : vector<4xf32>
    %17 = vector.multi_reduction <add>, %12, %cst_14 [0] : vector<256x4xf32> to vector<4xf32>
    %18 = vector.shape_cast %17 : vector<4xf32> to vector<1x4xf32>
    %19 = vector.shape_cast %18 : vector<1x4xf32> to vector<1x1x4xf32>
    %c0_15 = arith.constant 0 : index
    %c0_16 = arith.constant 0 : index
    %c0_17 = arith.constant 0 : index
    %20 = vector.load %arg7[%c0_15, %c0_16, %c0_17] : memref<1x1x4xf32, #tpu.memory_space<vmem>>, vector<1x1x4xf32>
    tpu.vector_store %arg7[%c0_15, %c0_16, %c0_17], %19 {strides = array<i32>} : memref<1x1x4xf32, #tpu.memory_space<vmem>>, vector<1x1x4xf32>,
    return
  }
  func.func @transform_0(%arg0: i32) -> (i32, i32) {
    %c0_i32 = arith.constant 0 : i32
    %c0_i32_0 = arith.constant 0 : i32
    %c0_i32_1 = arith.constant 0 : i32
    return %c0_i32, %c0_i32_0 : i32, i32
  }
  func.func @transform_1(%arg0: i32) -> (i32, i32) {
    %c0_i32 = arith.constant 0 : i32
    %c0_i32_0 = arith.constant 0 : i32
    %c0_i32_1 = arith.constant 0 : i32
    return %c0_i32, %c0_i32_0 : i32, i32
  }
  func.func @transform_2(%arg0: i32) -> (i32, i32) {
    %c0_i32 = arith.constant 0 : i32
    %c0_i32_0 = arith.constant 0 : i32
    return %arg0, %c0_i32 : i32, i32
  }
  func.func @transform_3(%arg0: i32) -> (i32, i32) {
    %c0_i32 = arith.constant 0 : i32
    %c0_i32_0 = arith.constant 0 : i32
    %c0_i32_1 = arith.constant 0 : i32
    return %c0_i32, %c0_i32_0 : i32, i32
  }
  func.func @transform_4(%arg0: i32) -> (i32, i32) {
    %c0_i32 = arith.constant 0 : i32
    %c0_i32_0 = arith.constant 0 : i32
    return %arg0, %c0_i32 : i32, i32
  }
  func.func @transform_5(%arg0: i32) -> (i32, i32, i32) {
    %c0_i32 = arith.constant 0 : i32
    %c0_i32_0 = arith.constant 0 : i32
    %c0_i32_1 = arith.constant 0 : i32
    return %arg0, %c0_i32, %c0_i32_0 : i32, i32, i32
  }
  func.func @transform_6(%arg0: i32) -> (i32, i32, i32) {
    %c0_i32 = arith.constant 0 : i32
    %c0_i32_0 = arith.constant 0 : i32
    %c0_i32_1 = arith.constant 0 : i32
    return %arg0, %c0_i32, %c0_i32_0 : i32, i32, i32
  }
}

module attributes {stable_mosaic.version = 11 : i64} {
  func.func @kernel(%arg0: i32, %arg1: memref<64x36xf32, #tpu.memory_space<vmem>>, %arg2: memref<36x4xf32, #tpu.memory_space<vmem>>, %arg3: memref<64x4xf32, #tpu.memory_space<vmem>>, %arg4: memref<1x1x4xf32, #tpu.memory_space<vmem>>, %arg5: memref<1x1x4xf32, #tpu.memory_space<vmem>>) attributes {dimension_semantics = [#tpu.dimension_semantics<parallel>], iteration_bounds = array<i64: 2>, scalar_prefetch = 0 : i64, scratch_operands = 0 : i64, tpu.core_type = #tpu.core_type<tc>, window_params = [{transform_indices = @transform_0, window_bounds = array<i64: 64, 36>}, {pipeline_mode = #tpu.pipeline_mode<synchronous>, transform_indices = @transform_1, window_bounds = array<i64: 36, 4>}, {transform_indices = @transform_2, window_bounds = array<i64: 64, 4>}, {transform_indices = @transform_3, window_bounds = array<i64: 1, 1, 4>}, {transform_indices = @transform_4, window_bounds = array<i64: 1, 1, 4>}]} {
    %c0 = arith.constant 0 : index
    %c0_0 = arith.constant 0 : index
    %0 = vector.load %arg1[%c0, %c0_0] : memref<64x36xf32, #tpu.memory_space<vmem>>, vector<64x36xf32>
    %c0_1 = arith.constant 0 : index
    %c0_2 = arith.constant 0 : index
    %1 = vector.load %arg2[%c0_1, %c0_2] : memref<36x4xf32, #tpu.memory_space<vmem>>, vector<36x4xf32>
    %cst = arith.constant dense<0.000000e+00> : vector<64x4xf32>
    %2 = tpu.matmul %0, %1, %cst {dimension_numbers = #tpu.dot_dimension_numbers<[1], [0], [0], [1], [0, 0, 1, 1], [], []>} : vector<64x36xf32>, vector<36x4xf32>, vector<64x4xf32> -> vector<64x4xf32>
    %c0_3 = arith.constant 0 : index
    %c0_4 = arith.constant 0 : index
    %3 = vector.load %arg3[%c0_3, %c0_4] : memref<64x4xf32, #tpu.memory_space<vmem>>, vector<64x4xf32>
    tpu.vector_store %arg3[%c0_3, %c0_4], %2 {strides = array<i32>} : memref<64x4xf32, #tpu.memory_space<vmem>>, vector<64x4xf32>,
    %4 = arith.mulf %2, %2 : vector<64x4xf32>
    %cst_5 = arith.constant dense<0.000000e+00> : vector<4xf32>
    %5 = vector.multi_reduction <add>, %2, %cst_5 [0] : vector<64x4xf32> to vector<4xf32>
    %6 = vector.shape_cast %5 : vector<4xf32> to vector<1x4xf32>
    %7 = vector.shape_cast %6 : vector<1x4xf32> to vector<1x1x4xf32>
    %c0_6 = arith.constant 0 : index
    %c0_7 = arith.constant 0 : index
    %c0_8 = arith.constant 0 : index
    %8 = vector.load %arg4[%c0_6, %c0_7, %c0_8] : memref<1x1x4xf32, #tpu.memory_space<vmem>>, vector<1x1x4xf32>
    tpu.vector_store %arg4[%c0_6, %c0_7, %c0_8], %7 {strides = array<i32>} : memref<1x1x4xf32, #tpu.memory_space<vmem>>, vector<1x1x4xf32>,
    %cst_9 = arith.constant dense<0.000000e+00> : vector<4xf32>
    %9 = vector.multi_reduction <add>, %4, %cst_9 [0] : vector<64x4xf32> to vector<4xf32>
    %10 = vector.shape_cast %9 : vector<4xf32> to vector<1x4xf32>
    %11 = vector.shape_cast %10 : vector<1x4xf32> to vector<1x1x4xf32>
    %c0_10 = arith.constant 0 : index
    %c0_11 = arith.constant 0 : index
    %c0_12 = arith.constant 0 : index
    %12 = vector.load %arg5[%c0_10, %c0_11, %c0_12] : memref<1x1x4xf32, #tpu.memory_space<vmem>>, vector<1x1x4xf32>
    tpu.vector_store %arg5[%c0_10, %c0_11, %c0_12], %11 {strides = array<i32>} : memref<1x1x4xf32, #tpu.memory_space<vmem>>, vector<1x1x4xf32>,
    return
  }
  func.func @transform_0(%arg0: i32) -> (i32, i32) {
    %c0_i32 = arith.constant 0 : i32
    %c0_i32_0 = arith.constant 0 : i32
    return %arg0, %c0_i32 : i32, i32
  }
  func.func @transform_1(%arg0: i32) -> (i32, i32) {
    %c0_i32 = arith.constant 0 : i32
    %c0_i32_0 = arith.constant 0 : i32
    %c0_i32_1 = arith.constant 0 : i32
    return %c0_i32, %c0_i32_0 : i32, i32
  }
  func.func @transform_2(%arg0: i32) -> (i32, i32) {
    %c0_i32 = arith.constant 0 : i32
    %c0_i32_0 = arith.constant 0 : i32
    return %arg0, %c0_i32 : i32, i32
  }
  func.func @transform_3(%arg0: i32) -> (i32, i32, i32) {
    %c0_i32 = arith.constant 0 : i32
    %c0_i32_0 = arith.constant 0 : i32
    %c0_i32_1 = arith.constant 0 : i32
    return %arg0, %c0_i32, %c0_i32_0 : i32, i32, i32
  }
  func.func @transform_4(%arg0: i32) -> (i32, i32, i32) {
    %c0_i32 = arith.constant 0 : i32
    %c0_i32_0 = arith.constant 0 : i32
    %c0_i32_1 = arith.constant 0 : i32
    return %arg0, %c0_i32, %c0_i32_0 : i32, i32, i32
  }
}

module attributes {stable_mosaic.version = 11 : i64} {
  func.func @kernel(%arg0: i32, %arg1: memref<1x4xf32, #tpu.memory_space<vmem>>, %arg2: memref<1x4xf32, #tpu.memory_space<vmem>>, %arg3: memref<64x4xf32, #tpu.memory_space<vmem>>, %arg4: memref<4x16xf32, #tpu.memory_space<vmem>>, %arg5: memref<64x16xf32, #tpu.memory_space<vmem>>) attributes {dimension_semantics = [#tpu.dimension_semantics<parallel>], iteration_bounds = array<i64: 2>, scalar_prefetch = 0 : i64, scratch_operands = 0 : i64, tpu.core_type = #tpu.core_type<tc>, window_params = [{pipeline_mode = #tpu.pipeline_mode<synchronous>, transform_indices = @transform_0, window_bounds = array<i64: 1, 4>}, {pipeline_mode = #tpu.pipeline_mode<synchronous>, transform_indices = @transform_1, window_bounds = array<i64: 1, 4>}, {transform_indices = @transform_2, window_bounds = array<i64: 64, 4>}, {pipeline_mode = #tpu.pipeline_mode<synchronous>, transform_indices = @transform_3, window_bounds = array<i64: 4, 16>}, {transform_indices = @transform_4, window_bounds = array<i64: 64, 16>}]} {
    %c0 = arith.constant 0 : index
    %c0_0 = arith.constant 0 : index
    %0 = vector.load %arg3[%c0, %c0_0] : memref<64x4xf32, #tpu.memory_space<vmem>>, vector<64x4xf32>
    %c0_1 = arith.constant 0 : index
    %c0_2 = arith.constant 0 : index
    %1 = vector.load %arg1[%c0_1, %c0_2] : memref<1x4xf32, #tpu.memory_space<vmem>>, vector<1x4xf32>
    %2 = vector.broadcast %1 : vector<1x4xf32> to vector<64x4xf32>
    %3 = arith.mulf %0, %2 : vector<64x4xf32>
    %c0_3 = arith.constant 0 : index
    %c0_4 = arith.constant 0 : index
    %4 = vector.load %arg2[%c0_3, %c0_4] : memref<1x4xf32, #tpu.memory_space<vmem>>, vector<1x4xf32>
    %5 = vector.broadcast %4 : vector<1x4xf32> to vector<64x4xf32>
    %6 = arith.addf %3, %5 : vector<64x4xf32>
    %cst = arith.constant 0.000000e+00 : f32
    %7 = vector.broadcast %cst : f32 to vector<64x4xf32>
    %8 = arith.maximumf %6, %7 : vector<64x4xf32>
    %c0_5 = arith.constant 0 : index
    %c0_6 = arith.constant 0 : index
    %9 = vector.load %arg4[%c0_5, %c0_6] : memref<4x16xf32, #tpu.memory_space<vmem>>, vector<4x16xf32>
    %cst_7 = arith.constant dense<0.000000e+00> : vector<64x16xf32>
    %10 = tpu.matmul %8, %9, %cst_7 {dimension_numbers = #tpu.dot_dimension_numbers<[1], [0], [0], [1], [0, 0, 1, 1], [], []>} : vector<64x4xf32>, vector<4x16xf32>, vector<64x16xf32> -> vector<64x16xf32>
    %c0_8 = arith.constant 0 : index
    %c0_9 = arith.constant 0 : index
    %11 = vector.load %arg5[%c0_8, %c0_9] : memref<64x16xf32, #tpu.memory_space<vmem>>, vector<64x16xf32>
    tpu.vector_store %arg5[%c0_8, %c0_9], %10 {strides = array<i32>} : memref<64x16xf32, #tpu.memory_space<vmem>>, vector<64x16xf32>,
    return
  }
  func.func @transform_0(%arg0: i32) -> (i32, i32) {
    %c0_i32 = arith.constant 0 : i32
    %c0_i32_0 = arith.constant 0 : i32
    %c0_i32_1 = arith.constant 0 : i32
    return %c0_i32, %c0_i32_0 : i32, i32
  }
  func.func @transform_1(%arg0: i32) -> (i32, i32) {
    %c0_i32 = arith.constant 0 : i32
    %c0_i32_0 = arith.constant 0 : i32
    %c0_i32_1 = arith.constant 0 : i32
    return %c0_i32, %c0_i32_0 : i32, i32
  }
  func.func @transform_2(%arg0: i32) -> (i32, i32) {
    %c0_i32 = arith.constant 0 : i32
    %c0_i32_0 = arith.constant 0 : i32
    return %arg0, %c0_i32 : i32, i32
  }
  func.func @transform_3(%arg0: i32) -> (i32, i32) {
    %c0_i32 = arith.constant 0 : i32
    %c0_i32_0 = arith.constant 0 : i32
    %c0_i32_1 = arith.constant 0 : i32
    return %c0_i32, %c0_i32_0 : i32, i32
  }
  func.func @transform_4(%arg0: i32) -> (i32, i32) {
    %c0_i32 = arith.constant 0 : i32
    %c0_i32_0 = arith.constant 0 : i32
    return %arg0, %c0_i32 : i32, i32
  }
}

module attributes {stable_mosaic.version = 11 : i64} {
  func.func @kernel(%arg0: i32, %arg1: memref<1x4xf32, #tpu.memory_space<vmem>>, %arg2: memref<1x4xf32, #tpu.memory_space<vmem>>, %arg3: memref<64x4xf32, #tpu.memory_space<vmem>>, %arg4: memref<4x16xf32, #tpu.memory_space<vmem>>, %arg5: memref<64x16xf32, #tpu.memory_space<vmem>>, %arg6: memref<64x16xf32, #tpu.memory_space<vmem>>) attributes {dimension_semantics = [#tpu.dimension_semantics<parallel>], iteration_bounds = array<i64: 2>, scalar_prefetch = 0 : i64, scratch_operands = 0 : i64, tpu.core_type = #tpu.core_type<tc>, window_params = [{pipeline_mode = #tpu.pipeline_mode<synchronous>, transform_indices = @transform_0, window_bounds = array<i64: 1, 4>}, {pipeline_mode = #tpu.pipeline_mode<synchronous>, transform_indices = @transform_1, window_bounds = array<i64: 1, 4>}, {transform_indices = @transform_2, window_bounds = array<i64: 64, 4>}, {pipeline_mode = #tpu.pipeline_mode<synchronous>, transform_indices = @transform_3, window_bounds = array<i64: 4, 16>}, {transform_indices = @transform_4, window_bounds = array<i64: 64, 16>}, {transform_indices = @transform_5, window_bounds = array<i64: 64, 16>}]} {
    %c0 = arith.constant 0 : index
    %c0_0 = arith.constant 0 : index
    %0 = vector.load %arg3[%c0, %c0_0] : memref<64x4xf32, #tpu.memory_space<vmem>>, vector<64x4xf32>
    %c0_1 = arith.constant 0 : index
    %c0_2 = arith.constant 0 : index
    %1 = vector.load %arg1[%c0_1, %c0_2] : memref<1x4xf32, #tpu.memory_space<vmem>>, vector<1x4xf32>
    %2 = vector.broadcast %1 : vector<1x4xf32> to vector<64x4xf32>
    %3 = arith.mulf %0, %2 : vector<64x4xf32>
    %c0_3 = arith.constant 0 : index
    %c0_4 = arith.constant 0 : index
    %4 = vector.load %arg2[%c0_3, %c0_4] : memref<1x4xf32, #tpu.memory_space<vmem>>, vector<1x4xf32>
    %5 = vector.broadcast %4 : vector<1x4xf32> to vector<64x4xf32>
    %6 = arith.addf %3, %5 : vector<64x4xf32>
    %cst = arith.constant 0.000000e+00 : f32
    %7 = vector.broadcast %cst : f32 to vector<64x4xf32>
    %8 = arith.maximumf %6, %7 : vector<64x4xf32>
    %c0_5 = arith.constant 0 : index
    %c0_6 = arith.constant 0 : index
    %9 = vector.load %arg4[%c0_5, %c0_6] : memref<4x16xf32, #tpu.memory_space<vmem>>, vector<4x16xf32>
    %cst_7 = arith.constant dense<0.000000e+00> : vector<64x16xf32>
    %10 = tpu.matmul %8, %9, %cst_7 {dimension_numbers = #tpu.dot_dimension_numbers<[1], [0], [0], [1], [0, 0, 1, 1], [], []>} : vector<64x4xf32>, vector<4x16xf32>, vector<64x16xf32> -> vector<64x16xf32>
    %c0_8 = arith.constant 0 : index
    %c0_9 = arith.constant 0 : index
    %11 = vector.load %arg5[%c0_8, %c0_9] : memref<64x16xf32, #tpu.memory_space<vmem>>, vector<64x16xf32>
    %12 = arith.addf %10, %11 : vector<64x16xf32>
    %c0_10 = arith.constant 0 : index
    %c0_11 = arith.constant 0 : index
    %13 = vector.load %arg6[%c0_10, %c0_11] : memref<64x16xf32, #tpu.memory_space<vmem>>, vector<64x16xf32>
    tpu.vector_store %arg6[%c0_10, %c0_11], %12 {strides = array<i32>} : memref<64x16xf32, #tpu.memory_space<vmem>>, vector<64x16xf32>,
    return
  }
  func.func @transform_0(%arg0: i32) -> (i32, i32) {
    %c0_i32 = arith.constant 0 : i32
    %c0_i32_0 = arith.constant 0 : i32
    %c0_i32_1 = arith.constant 0 : i32
    return %c0_i32, %c0_i32_0 : i32, i32
  }
  func.func @transform_1(%arg0: i32) -> (i32, i32) {
    %c0_i32 = arith.constant 0 : i32
    %c0_i32_0 = arith.constant 0 : i32
    %c0_i32_1 = arith.constant 0 : i32
    return %c0_i32, %c0_i32_0 : i32, i32
  }
  func.func @transform_2(%arg0: i32) -> (i32, i32) {
    %c0_i32 = arith.constant 0 : i32
    %c0_i32_0 = arith.constant 0 : i32
    return %arg0, %c0_i32 : i32, i32
  }
  func.func @transform_3(%arg0: i32) -> (i32, i32) {
    %c0_i32 = arith.constant 0 : i32
    %c0_i32_0 = arith.constant 0 : i32
    %c0_i32_1 = arith.constant 0 : i32
    return %c0_i32, %c0_i32_0 : i32, i32
  }
  func.func @transform_4(%arg0: i32) -> (i32, i32) {
    %c0_i32 = arith.constant 0 : i32
    %c0_i32_0 = arith.constant 0 : i32
    return %arg0, %c0_i32 : i32, i32
  }
  func.func @transform_5(%arg0: i32) -> (i32, i32) {
    %c0_i32 = arith.constant 0 : i32
    %c0_i32_0 = arith.constant 0 : i32
    return %arg0, %c0_i32 : i32, i32
  }
}

</mosaic_0001>

<bundles_post_ra>
// kernel: preact_bottleneck_forward.5
= control target key start
LH: loop header
LB: loop body
LE: loop exit
PB: predicated region body
PF: predicated region fallthrough
CT: control target
= control target key end

     0   :  { %s535_s15 = smov 0   ;;  %s584_s0 = inlined_call_operand.vmem [shape: f32[1,4], index: 0, kind: input, shape index: {}]   ;;  %s585_s1 = inlined_call_operand.vmem [shape: f32[1,4], index: 1, kind: input, shape index: {}]   ;;  %s586_s2 = inlined_call_operand.vmem [shape: f32[128,4], index: 2, kind: input, shape index: {}]   ;;  %s587_s3 = inlined_call_operand.vmem [shape: f32[4,16], index: 3, kind: input, shape index: {}]   ;;  %s588_s4 = inlined_call_operand.vmem [shape: f32[128,16], index: 4, kind: output, shape index: {}]  }
   0x1 LB: > { %s447_s16 = sadd.s32 4294967295, %s508_s15   ;;  %p451_p0 = scmp.ge.s32.totalorder %s508_s15, 1  ;;  %s508_s15 = sphi %s535_s15, %s14_s15  }
   0x2   : > { %p163_p1 = scmp.lt.s32.totalorder %s508_s15, 3 }
   0x4   : > { %p164_p2 = pnand %p451_p0, %p163_p1 }
   0x5   : > { %v247_v0 = vld [vmem:[%s587_s3] sm:$0xf] (!%p164_p2)  ;;  %vm273_vm0 = vcmask (!%p164_p2), 1043456   ;;  %s452_s19 = sshll.u32 (!%p164_p2), %s447_s16, 3  ;;  %vm248_vm1 = vcmask (!%p164_p2), 31744   ;;  %vm382_vm2 = vcmask (!%p164_p2), 130048  }
   0x6   : > { %167 = sbr.rel (%p164_p2) target bundleno = 243 (0xf3), region = 36  ;;  %478 = vmatprep.subr.msk.mxu0 (!%p164_p2), %vm273_vm0, %v247_v0  ;;  %492 = vmatprep.subr.msk.mxu1 (!%p164_p2), %vm273_vm0, %v247_v0  ;;  %p190_p3 = scmp.lt.s32.totalorder (!%p164_p2), %s452_s19, 15  ;;  %v456_v1 = vld [vmem:[%s584_s0] ss:$0 sm:$0xff] (!%p164_p2) }
   0x7   : > { %479 = vmatpush3.msk.msra.mxu0 (!%p164_p2), %vm273_vm0, %v247_v0  ;;  %493 = vmatpush3.msk.msra.mxu1 (!%p164_p2), %vm273_vm0, %v247_v0  ;;  %v457_v2 = vld [vmem:[%s585_s1] ss:$0 sm:$0xff] (!%p164_p2) }
   0xd   : > { %s590_s19 = smov (!%p190_p3, %s452_s19), 15 }
   0xe   : > { %s453_s20 = sshll.u32 %s590_s19, 3 }
   0xf   : > { %s193_s25 = scalar_lea.vmem %s586_s2, %s453_s20  ;;  %s199_s30 = scalar_lea.vmem %s588_s4, %s453_s20 }
  0x10   : > { %v201_v3 = vld [vmem:[%s193_s25] sm:$0xff]  ;;  %v202_v5 = vld [vmem:[%s193_s25 + $0x8] sm:$0xff]  ;;  %v203_v10 = vld [vmem:[%s193_s25 + $0x10] sm:$0xff] }
  0x11   : > { %v205_v4 = vld [vmem:[%s193_s25 + $0x20] sm:$0xff]  ;;  %v216_v6 = vmul.f32 %v456_v1, %v201_v3  ;;  %v217_v8 = vmul.f32 %v456_v1, %v202_v5  ;;  %v206_v9 = vld [vmem:[%s193_s25 + $0x28] sm:$0xff]  ;;  %v207_v11 = vld [vmem:[%s193_s25 + $0x30] sm:$0xff]  ;;  %v218_v13 = vmul.f32 %v456_v1, %v203_v10 }
  0x12   : > { %v220_v7 = vmul.f32 %v456_v1, %v205_v4  ;;  %v221_v12 = vmul.f32 %v456_v1, %v206_v9  ;;  %v222_v14 = vmul.f32 %v456_v1, %v207_v11  ;;  %v204_v15 = vld [vmem:[%s193_s25 + $0x18] sm:$0xff] }
  0x13   : > { %v208_v16 = vld [vmem:[%s193_s25 + $0x38] sm:$0xff]  ;;  %v231_v17 = vadd.f32 %v457_v2, %v216_v6  ;;  %v232_v19 = vadd.f32 %v457_v2, %v217_v8  ;;  %v219_v20 = vmul.f32 %v456_v1, %v204_v15  ;;  %v233_v22 = vadd.f32 %v457_v2, %v218_v13 }
  0x14   : > { %v235_v18 = vadd.f32 %v457_v2, %v220_v7  ;;  %v236_v21 = vadd.f32 %v457_v2, %v221_v12  ;;  %v237_v23 = vadd.f32 %v457_v2, %v222_v14  ;;  %v223_v24 = vmul.f32 %v456_v1, %v208_v16 }
  0x15   : > { %v239_v25 = vmax.f32 %v231_v17, 0.0  ;;  %v240_v27 = vmax.f32 %v232_v19, 0.0  ;;  %v234_v28 = vadd.f32 %v457_v2, %v219_v20  ;;  %v241_v30 = vmax.f32 %v233_v22, 0.0 }
  0x16   : > { %v243_v26 = vmax.f32 %v235_v18, 0.0  ;;  %v244_v29 = vmax.f32 %v236_v21, 0.0  ;;  %v245_v31 = vmax.f32 %v237_v23, 0.0  ;;  %v238_v32 = vadd.f32 %v457_v2, %v223_v24 }
  0x17   : > { %480 = vmatprep.mubr.msk.f32.mxu0 %vm248_vm1, %v239_v25  ;;  %v242_v33 = vmax.f32 %v234_v28, 0.0 }
  0x18   : > { %486 = vmatprep.mubr.msk.f32.mxu1 %vm248_vm1, %v243_v26  ;;  %481 = vmatmul.mubr.msk.f32.vlgmr.msra.gmra.mrb[0].mxu0 %vm248_vm1, %v240_v27  ;;  %v246_v34 = vmax.f32 %v238_v32, 0.0 }
  0x19   : > { %487 = vmatmul.mubr.msk.f32.vlgmr.msra.gmra.mrb[0].mxu1 %vm248_vm1, %v244_v29  ;;  %483 = vmatprep.mubr.msk.f32.mxu0 %vm248_vm1, %v241_v30 }
  0x1a   : > { %489 = vmatprep.mubr.msk.f32.mxu1 %vm248_vm1, %v245_v31 }
  0x1c   : > { %484 = vmatmul.mubr.msk.f32.gmra.mrb[2].mxu0 %vm248_vm1, %v242_v33 }
  0x1d   : > { %490 = vmatmul.mubr.msk.f32.gmra.mrb[2].mxu1 %vm248_vm1, %v246_v34 }
  0xeb   : > { %v482_v35 = vpop.f32.mrb[0].mxu0 }
  0xec   : > { %v488_v36 = vpop.f32.mrb[0].mxu1  ;;  %384 = vst.msk [vmem:[%s199_s30 + $0x8] sm:$0xff] %vm382_vm2, %v482_v35  ;;  %v343_v37 = vpop.f32.mrb[1].mxu0 }
  0xed   : > { %388 = vst.msk [vmem:[%s199_s30 + $0x28] sm:$0xff] %vm382_vm2, %v488_v36  ;;  %v363_v38 = vpop.f32.mrb[1].mxu1  ;;  %383 = vst.msk [vmem:[%s199_s30] sm:$0xff] %vm382_vm2, %v343_v37 }
  0xee   : > { %387 = vst.msk [vmem:[%s199_s30 + $0x20] sm:$0xff] %vm382_vm2, %v363_v38 }
  0xef   : > { %v485_v39 = vpop.f32.mrb[2].mxu0 }
  0xf0   : > { %v491_v40 = vpop.f32.mrb[2].mxu1  ;;  %386 = vst.msk [vmem:[%s199_s30 + $0x18] sm:$0xff] %vm382_vm2, %v485_v39  ;;  %v353_v41 = vpop.f32.mrb[3].mxu0 }
  0xf1   : > { %390 = vst.msk [vmem:[%s199_s30 + $0x38] sm:$0xff] %vm382_vm2, %v491_v40  ;;  %v373_v42 = vpop.f32.mrb[3].mxu1  ;;  %385 = vst.msk [vmem:[%s199_s30 + $0x10] sm:$0xff] %vm382_vm2, %v353_v41 }
  0xf2   : > { %389 = vst.msk [vmem:[%s199_s30 + $0x30] sm:$0xff] %vm382_vm2, %v373_v42 }
  0xf3 PF: > { %s14_s15 = sadd.s32 1, %s508_s15  }
  0xf4   : > { %p11_p4 = scmp.ge.s32.totalorder %s14_s15, 4  }
  0xf6   :  { %13 = sbr.rel (!%p11_p4) target bundleno = 1 (0x1), region = 66 }

// kernel: preact_bottleneck_forward.6
= control target key start
LH: loop header
LB: loop body
LE: loop exit
PB: predicated region body
PF: predicated region fallthrough
CT: control target
= control target key end

     0   :  { %s643_s15 = smov 0   ;;  %s725_s0 = inlined_call_operand.vmem [shape: f32[128,36], index: 0, kind: input, shape index: {}]   ;;  %s726_s1 = inlined_call_operand.vmem [shape: f32[36,4], index: 1, kind: input, shape index: {}]   ;;  %s727_s2 = inlined_call_operand.vmem [shape: f32[128,4], index: 2, kind: output, shape index: {0}]   ;;  %s728_s3 = inlined_call_operand.vmem [shape: f32[2,1,4], index: 3, kind: output, shape index: {1}]   ;;  %s729_s4 = inlined_call_operand.vmem [shape: f32[2,1,4], index: 4, kind: output, shape index: {2}]  }
   0x1 LB: > { %s649_s16 = sadd.s32 4294967295, %s616_s15   ;;  %p537_p0 = scmp.ge.s32.totalorder %s616_s15, 1  ;;  %s616_s15 = sphi %s643_s15, %s15_s15  }
   0x2   : > { %p168_p1 = scmp.lt.s32.totalorder %s616_s15, 3 }
   0x4   : > { %p169_p2 = pnand %p537_p0, %p168_p1 }
   0x5   : > { %v226_v0 = vld [vmem:[%s726_s1] sm:$0xff] (!%p169_p2)  ;;  %v227_v1 = vld [vmem:[%s726_s1 + $0x8] sm:$0xff] (!%p169_p2)  ;;  %v228_v2 = vld [vmem:[%s726_s1 + $0x10] sm:$0xff] (!%p169_p2)  ;;  %s538_s23 = sshll.u32 (!%p169_p2), %s649_s16, 3  ;;  %vm231_vm0 = vcmask (!%p169_p2), 293888   ;;  %vm256_vm1 = vcmask (!%p169_p2), 1043456  }
   0x6   : > { %172 = sbr.rel (%p169_p2) target bundleno = 263 (0x107), region = 28  ;;  %v588_v3 = vpack.c.bf16 (!%p169_p2), %v227_v1, %v226_v0  ;;  %v229_v4 = vld [vmem:[%s726_s1 + $0x18] sm:$0xff] (!%p169_p2)  ;;  %p201_p3 = scmp.lt.s32.totalorder (!%p169_p2), %s538_s23, 15  ;;  %v230_v6 = vld [vmem:[%s726_s1 + $0x20] sm:$0xf] (!%p169_p2)  ;;  %vm365_vm2 = vcmask (!%p169_p2), 31744  }
   0x7   : > { %v592_v5 = vpack.c.bf16 (!%p169_p2), %v229_v4, %v228_v2  ;;  %p212_p4 = scmp.lt.s32.totalorder (!%p169_p2), %s649_s16, 1  ;;  %vm403_vm3 = vcmask (!%p169_p2), 24576  }
   0x8   : > { %589 = vmatprep.subr.bf16.mxu0 (!%p169_p2), %v588_v3  ;;  %596 = vmatprep.subr.bf16.mxu1 (!%p169_p2), %v588_v3 }
   0x9   : > { %591 = vmatpush3.bf16.msra.mxu0 (!%p169_p2), %v588_v3  ;;  %599 = vmatpush3.bf16.msra.mxu1 (!%p169_p2), %v588_v3 }
   0xa   : > { %593 = vmatprep.subr.bf16.mxu0 (!%p169_p2), %v592_v5  ;;  %597 = vmatprep.subr.bf16.mxu1 (!%p169_p2), %v592_v5 }
   0xd   : > { %s731_s23 = smov (!%p201_p3, %s538_s23), 15  ;;  %595 = vmatpush3.bf16.msra.mxu0 %v592_v5  ;;  %600 = vmatpush3.bf16.msra.mxu1 %v592_v5  ;;  %s733_s16 = smov (!%p212_p4, %s649_s16), 1 }
   0xe   : > { %s539_s26 = sshll.u32 %s731_s23, 3  ;;  %574 = vmatprep.subr.msk.mxu0 %vm256_vm1, %v230_v6  ;;  %598 = vmatprep.subr.msk.mxu1 %vm256_vm1, %v230_v6  ;;  %s214_s11 = scalar_lea.vmem %s728_s3, %s733_s16 }
   0xf   : > { %s204_s5 = scalar_lea.vmem %s725_s0, %s539_s26  ;;  %s210_s8 = scalar_lea.vmem %s727_s2, %s539_s26 }
  0x10   : > { %v218_v7 = vld [vmem:[%s204_s5] sm:$0xff]  ;;  %v219_v9 = vld [vmem:[%s204_s5 + $0x8] sm:$0xff]  ;;  %v220_v10 = vld [vmem:[%s204_s5 + $0x10] sm:$0xff]  ;;  %s217_s14 = scalar_lea.vmem %s729_s4, %s733_s16 }
  0x11   : > { %576 = vmatprep.mubr.msk.f32.mxu0 %vm231_vm0, %v218_v7  ;;  %v222_v8 = vld [vmem:[%s204_s5 + $0x20] sm:$0xff]  ;;  %v223_v11 = vld [vmem:[%s204_s5 + $0x28] sm:$0xff]  ;;  %575 = vmatpush3.msk.msra.mxu0 %vm256_vm1, %v230_v6  ;;  %v224_v12 = vld [vmem:[%s204_s5 + $0x30] sm:$0xff] }
  0x12   : > { %582 = vmatprep.mubr.msk.f32.mxu1 %vm231_vm0, %v222_v8  ;;  %577 = vmatmul.mubr.msk.f32.vlgmr.msra.gmra.mrb[0].mxu0 %vm231_vm0, %v219_v9  ;;  %v221_v13 = vld [vmem:[%s204_s5 + $0x18] sm:$0xff] }
  0x13   : > { %601 = vmatpush3.msk.msra.mxu1 %vm256_vm1, %v230_v6  ;;  %579 = vmatprep.mubr.msk.f32.mxu0 %vm231_vm0, %v220_v10  ;;  %v225_v14 = vld [vmem:[%s204_s5 + $0x38] sm:$0xff] }
  0x14   : > { %583 = vmatmul.mubr.msk.f32.vlgmr.msra.gmra.mrb[0].mxu1 %vm231_vm0, %v223_v11 }
  0x15   : > { %585 = vmatprep.mubr.msk.f32.mxu1 %vm231_vm0, %v224_v12 }
  0x16   : > { %580 = vmatmul.mubr.msk.f32.gmra.mrb[2].mxu0 %vm231_vm0, %v221_v13 }
  0x18   : > { %586 = vmatmul.mubr.msk.f32.gmra.mrb[2].mxu1 %vm231_vm0, %v225_v14 }
  0xe5   : > { %v578_v15 = vpop.f32.mrb[0].mxu0 }
  0xe6   : > { %367 = vst.msk [vmem:[%s210_s8 + $0x8] sm:$0xff] %vm365_vm2, %v578_v15  ;;  %v375_v16 = vmul.f32 %v578_v15, %v578_v15  ;;  %v383_v17 = vsel %vm365_vm2, %v578_v15, 0.0  ;;  %v326_v18 = vpop.f32.mrb[1].mxu0 }
  0xe7   : > { %v584_v19 = vpop.f32.mrb[0].mxu1  ;;  %366 = vst.msk [vmem:[%s210_s8] sm:$0xff] %vm365_vm2, %v326_v18  ;;  %v374_v20 = vmul.f32 %v326_v18, %v326_v18  ;;  %v382_v21 = vsel %vm365_vm2, %v326_v18, 0.0 }
  0xe8   : > { %371 = vst.msk [vmem:[%s210_s8 + $0x28] sm:$0xff] %vm365_vm2, %v584_v19  ;;  %v346_v22 = vpop.f32.mrb[1].mxu1  ;;  %v406_v23 = vsel %vm365_vm2, %v375_v16, 0.0  ;;  %v384_v24 = vadd.f32 %v383_v17, %v382_v21  ;;  %v379_v42 = vmul.f32 %v584_v19, %v584_v19  ;;  %v391_v47 = vsel %vm365_vm2, %v584_v19, 0.0 }
  0xe9   : > { %370 = vst.msk [vmem:[%s210_s8 + $0x20] sm:$0xff] %vm365_vm2, %v346_v22  ;;  %v405_v25 = vsel %vm365_vm2, %v374_v20, 0.0  ;;  %v581_v26 = vpop.f32.mrb[2].mxu0  ;;  %v378_v33 = vmul.f32 %v346_v22, %v346_v22  ;;  %v389_v38 = vsel %vm365_vm2, %v346_v22, 0.0 }
  0xea   : > { %v407_v27 = vadd.f32 %v406_v23, %v405_v25  ;;  %369 = vst.msk [vmem:[%s210_s8 + $0x18] sm:$0xff] %vm365_vm2, %v581_v26  ;;  %v336_v28 = vpop.f32.mrb[3].mxu0  ;;  %v377_v30 = vmul.f32 %v581_v26, %v581_v26  ;;  %v387_v36 = vsel %vm365_vm2, %v581_v26, 0.0  ;;  %v414_v51 = vsel %vm365_vm2, %v379_v42, 0.0 }
  0xeb   : > { %v587_v29 = vpop.f32.mrb[2].mxu1  ;;  %368 = vst.msk [vmem:[%s210_s8 + $0x10] sm:$0xff] %vm365_vm2, %v336_v28  ;;  %v376_v31 = vmul.f32 %v336_v28, %v336_v28  ;;  %v385_v32 = vsel %vm365_vm2, %v336_v28, 0.0  ;;  %v412_v43 = vsel %vm365_vm2, %v378_v33, 0.0 }
  0xec   : > { %373 = vst.msk [vmem:[%s210_s8 + $0x38] sm:$0xff] %vm365_vm2, %v587_v29  ;;  %v356_v34 = vpop.f32.mrb[3].mxu1  ;;  %v386_v35 = vadd.f32 %v385_v32, %v384_v24  ;;  %v410_v41 = vsel %vm365_vm2, %v377_v30, 0.0  ;;  %v381_v52 = vmul.f32 %v587_v29, %v587_v29  ;;  %v395_v56 = vsel %vm365_vm2, %v587_v29, 0.0 }
  0xed   : > { %372 = vst.msk [vmem:[%s210_s8 + $0x30] sm:$0xff] %vm365_vm2, %v356_v34  ;;  %v408_v37 = vsel %vm365_vm2, %v376_v31, 0.0  ;;  %v380_v44 = vmul.f32 %v356_v34, %v356_v34  ;;  %v393_v48 = vsel %vm365_vm2, %v356_v34, 0.0 }
  0xee   : > { %v388_v39 = vadd.f32 %v387_v36, %v386_v35  ;;  %v409_v40 = vadd.f32 %v408_v37, %v407_v27  ;;  %v418_v59 = vsel %vm365_vm2, %v381_v52, 0.0 }
  0xef   : > { %v416_v53 = vsel %vm365_vm2, %v380_v44, 0.0 }
  0xf0   : > { %v411_v45 = vadd.f32 %v410_v41, %v409_v40  ;;  %v390_v46 = vadd.f32 %v389_v38, %v388_v39 }
  0xf2   : > { %v413_v49 = vadd.f32 %v412_v43, %v411_v45  ;;  %v392_v50 = vadd.f32 %v391_v47, %v390_v46 }
  0xf4   : > { %v394_v54 = vadd.f32 %v393_v48, %v392_v50  ;;  %v415_v55 = vadd.f32 %v414_v51, %v413_v49 }
  0xf6   : > { %v396_v57 = vadd.f32 %v395_v56, %v394_v54  ;;  %v417_v58 = vadd.f32 %v416_v53, %v415_v55 }
  0xf8   : > { %v397_v60 = vrot.slane %v396_v57, 4  ;;  %v419_v61 = vadd.f32 %v418_v59, %v417_v58 }
  0xfa   : > { %v398_v62 = vadd.f32 %v397_v60, %v396_v57  ;;  %v420_v63 = vrot.slane %v419_v61, 4 }
  0xfc   : > { %v399_v0 = vrot.slane %v398_v62, 2  ;;  %v421_v1 = vadd.f32 %v420_v63, %v419_v61 }
  0xfe   : > { %v400_v2 = vadd.f32 %v399_v0, %v398_v62  ;;  %v422_v3 = vrot.slane %v421_v1, 2 }
 0x100   : > { %v401_v4 = vrot.slane %v400_v2, 1  ;;  %v423_v5 = vadd.f32 %v422_v3, %v421_v1 }
 0x102   : > { %v402_v6 = vadd.f32 %v401_v4, %v400_v2  ;;  %v424_v7 = vrot.slane %v423_v5, 1 }
 0x104   : > { %404 = vst.msk [vmem:[%s214_s11] sm:$0x1] %vm403_vm3, %v402_v6  ;;  %v425_v8 = vadd.f32 %v424_v7, %v423_v5 }
 0x106   : > { %426 = vst.msk [vmem:[%s217_s14] sm:$0x1] %vm403_vm3, %v425_v8 }
 0x107 PF: > { %s15_s15 = sadd.s32 1, %s616_s15  }
 0x108   : > { %p12_p5 = scmp.ge.s32.totalorder %s15_s15, 4  }
 0x10a   :  { %14 = sbr.rel (!%p12_p5) target bundleno = 1 (0x1), region = 82 }

// kernel: preact_bottleneck_forward.4
= control target key start
LH: loop header
LB: loop body
LE: loop exit
PB: predicated region body
PF: predicated region fallthrough
CT: control target
= control target key end

     0   :  { %s1234_s21 = smov 0   ;;  %s1614_s0 = inlined_call_operand.vmem [shape: f32[1,4], index: 0, kind: input, shape index: {}]   ;;  %s1615_s1 = inlined_call_operand.vmem [shape: f32[1,4], index: 1, kind: input, shape index: {}]   ;;  %s1616_s2 = inlined_call_operand.vmem [shape: f32[512,4], index: 2, kind: input, shape index: {}]   ;;  %s1617_s3 = inlined_call_operand.vmem [shape: f32[4,4], index: 3, kind: input, shape index: {}]   ;;  %s1618_s4 = inlined_call_operand.vmem [shape: f32[512,4], index: 4, kind: output, shape index: {0}]   ;;  %s1619_s5 = inlined_call_operand.vmem [shape: f32[2,1,4], index: 5, kind: output, shape index: {1}]   ;;  %s1620_s6 = inlined_call_operand.vmem [shape: f32[2,1,4], index: 6, kind: output, shape index: {2}]  }
   0x1 LB: > { %s1240_s22 = sadd.s32 4294967295, %s1197_s21   ;;  %p1056_p0 = scmp.ge.s32.totalorder %s1197_s21, 1  ;;  %s1197_s21 = sphi %s1234_s21, %s17_s21  }
   0x2   : > { %p218_p1 = scmp.lt.s32.totalorder %s1197_s21, 3 }
   0x4   : > { %p219_p2 = pnand %p1056_p0, %p218_p1 }
   0x5   : > { %v414_v0 = vld [vmem:[%s1617_s3] sm:$0xf] (!%p219_p2)  ;;  %vm512_vm0 = vcmask (!%p219_p2), 1043456   ;;  %s1057_s25 = sshll.u32 (!%p219_p2), %s1240_s22, 5  ;;  %vm415_vm1 = vcmask (!%p219_p2), 31744   ;;  %p266_p4 = scmp.lt.s32.totalorder (!%p219_p2), %s1240_s22, 1 }
   0x6   : > { %222 = sbr.rel (%p219_p2) target bundleno = 317 (0x13d), region = 36  ;;  %1131 = vmatprep.subr.msk.mxu0 (!%p219_p2), %vm512_vm0, %v414_v0  ;;  %p255_p3 = scmp.lt.s32.totalorder (!%p219_p2), %s1057_s25, 63  ;;  %1181 = vmatprep.subr.msk.mxu1 (!%p219_p2), %vm512_vm0, %v414_v0  ;;  %v1254_v1 = vld [vmem:[%s1614_s0] ss:$0 sm:$0xff] (!%p219_p2)  ;;  %vm874_vm2 = vcmask (!%p219_p2), 24576  }
   0x7   : > { %1132 = vmatpush3.msk.msra.mxu0 (!%p219_p2), %vm512_vm0, %v414_v0  ;;  %1182 = vmatpush3.msk.msra.mxu1 (!%p219_p2), %vm512_vm0, %v414_v0  ;;  %v1266_v2 = vld [vmem:[%s1615_s1] ss:$0 sm:$0xff] (!%p219_p2) }
   0xd   : > { %s1622_s25 = smov (!%p255_p3, %s1057_s25), 63  ;;  %s1624_s22 = smov (!%p266_p4, %s1240_s22), 1 }
   0xe   : > { %s1058_s26 = sshll.u32 %s1622_s25, 3  ;;  %s268_s15 = scalar_lea.vmem %s1619_s5, %s1624_s22 }
   0xf   : > { %s1261_s7 = scalar_lea.vmem %s1616_s2, %s1058_s26  ;;  %s1401_s12 = scalar_lea.vmem %s1618_s4, %s1058_s26 }
  0x10   : > { %v272_v3 = vld [vmem:[%s1261_s7] sm:$0xff]  ;;  %v273_v4 = vld [vmem:[%s1261_s7 + $0x8] sm:$0xff]  ;;  %v274_v5 = vld [vmem:[%s1261_s7 + $0x10] sm:$0xff]  ;;  %s271_s18 = scalar_lea.vmem %s1620_s6, %s1624_s22 }
  0x11   : > { %v311_v6 = vmul.f32 %v1254_v1, %v272_v3  ;;  %v312_v7 = vmul.f32 %v1254_v1, %v273_v4  ;;  %v313_v8 = vmul.f32 %v1254_v1, %v274_v5  ;;  %v275_v9 = vld [vmem:[%s1261_s7 + $0x18] sm:$0xff]  ;;  %v276_v10 = vld [vmem:[%s1261_s7 + $0x20] sm:$0xff]  ;;  %v277_v11 = vld [vmem:[%s1261_s7 + $0x28] sm:$0xff] }
  0x12   : > { %v314_v12 = vmul.f32 %v1254_v1, %v275_v9  ;;  %v315_v13 = vmul.f32 %v1254_v1, %v276_v10  ;;  %v278_v14 = vld [vmem:[%s1261_s7 + $0x30] sm:$0xff]  ;;  %v279_v15 = vld [vmem:[%s1261_s7 + $0x38] sm:$0xff]  ;;  %v316_v19 = vmul.f32 %v1254_v1, %v277_v11  ;;  %v280_v27 = vld [vmem:[%s1261_s7 + $0x40] sm:$0xff] }
  0x13   : > { %v350_v16 = vadd.f32 %v1266_v2, %v311_v6  ;;  %v351_v17 = vadd.f32 %v1266_v2, %v312_v7  ;;  %v352_v18 = vadd.f32 %v1266_v2, %v313_v8  ;;  %v317_v21 = vmul.f32 %v1254_v1, %v278_v14  ;;  %v281_v29 = vld [vmem:[%s1261_s7 + $0x48] sm:$0xff]  ;;  %v282_v34 = vld [vmem:[%s1261_s7 + $0x50] sm:$0xff]  ;;  %v283_v36 = vld [vmem:[%s1261_s7 + $0x58] sm:$0xff] }
  0x14   : > { %v353_v20 = vadd.f32 %v1266_v2, %v314_v12  ;;  %v318_v22 = vmul.f32 %v1254_v1, %v279_v15  ;;  %v354_v26 = vadd.f32 %v1266_v2, %v315_v13  ;;  %v355_v28 = vadd.f32 %v1266_v2, %v316_v19  ;;  %v288_v38 = vld [vmem:[%s1261_s7 + $0x80] sm:$0xff]  ;;  %v289_v39 = vld [vmem:[%s1261_s7 + $0x88] sm:$0xff]  ;;  %v290_v40 = vld [vmem:[%s1261_s7 + $0x90] sm:$0xff] }
  0x15   : > { %v382_v23 = vmax.f32 %v350_v16, 0.0  ;;  %v383_v24 = vmax.f32 %v351_v17, 0.0  ;;  %v384_v25 = vmax.f32 %v352_v18, 0.0  ;;  %v356_v31 = vadd.f32 %v1266_v2, %v317_v21  ;;  %v284_v42 = vld [vmem:[%s1261_s7 + $0x60] sm:$0xff]  ;;  %v291_v43 = vld [vmem:[%s1261_s7 + $0x98] sm:$0xff]  ;;  %v293_v53 = vld [vmem:[%s1261_s7 + $0xa8] sm:$0xff] }
  0x16   : > { %v385_v30 = vmax.f32 %v353_v20, 0.0  ;;  %v357_v32 = vadd.f32 %v1266_v2, %v318_v22  ;;  %v319_v33 = vmul.f32 %v1254_v1, %v280_v27  ;;  %v386_v35 = vmax.f32 %v354_v26, 0.0  ;;  %v292_v44 = vld [vmem:[%s1261_s7 + $0xa0] sm:$0xff]  ;;  %v294_v54 = vld [vmem:[%s1261_s7 + $0xb0] sm:$0xff]  ;;  %v285_v0 = vld [vmem:[%s1261_s7 + $0x68] sm:$0xff] }
  0x17   : > { %1133 = vmatprep.mubr.msk.f32.mxu0 %vm415_vm1, %v382_v23  ;;  %v320_v37 = vmul.f32 %v1254_v1, %v281_v29  ;;  %v321_v41 = vmul.f32 %v1254_v1, %v282_v34  ;;  %v387_v45 = vmax.f32 %v355_v28, 0.0  ;;  %v388_v46 = vmax.f32 %v356_v31, 0.0  ;;  %v286_v3 = vld [vmem:[%s1261_s7 + $0x70] sm:$0xff]  ;;  %v295_v11 = vld [vmem:[%s1261_s7 + $0xb8] sm:$0xff]  ;;  %v296_v12 = vld [vmem:[%s1261_s7 + $0xc0] sm:$0xff] }
  0x18   : > { %1134 = vmatmul.mubr.msk.f32.vlgmr.msra.gmra.mrb[0].mxu0 %vm415_vm1, %v383_v24  ;;  %v389_v47 = vmax.f32 %v357_v32, 0.0  ;;  %v358_v48 = vadd.f32 %v1266_v2, %v319_v33  ;;  %v322_v49 = vmul.f32 %v1254_v1, %v283_v36  ;;  %v327_v50 = vmul.f32 %v1254_v1, %v288_v38  ;;  %v287_v18 = vld [vmem:[%s1261_s7 + $0x78] sm:$0xff]  ;;  %v297_v26 = vld [vmem:[%s1261_s7 + $0xc8] sm:$0xff]  ;;  %v298_v27 = vld [vmem:[%s1261_s7 + $0xd0] sm:$0xff] }
  0x19   : > { %1136 = vmatprep.mubr.msk.f32.mxu0 %vm415_vm1, %v384_v25  ;;  %v328_v51 = vmul.f32 %v1254_v1, %v289_v39  ;;  %v329_v52 = vmul.f32 %v1254_v1, %v290_v40  ;;  %v359_v55 = vadd.f32 %v1266_v2, %v320_v37  ;;  %v323_v56 = vmul.f32 %v1254_v1, %v284_v42  ;;  %v299_v39 = vld [vmem:[%s1261_s7 + $0xd8] sm:$0xff]  ;;  %v300_v40 = vld [vmem:[%s1261_s7 + $0xe0] sm:$0xff] }
  0x1a   : > { %v330_v57 = vmul.f32 %v1254_v1, %v291_v43  ;;  %v331_v58 = vmul.f32 %v1254_v1, %v292_v44  ;;  %v360_v59 = vadd.f32 %v1266_v2, %v321_v41  ;;  %v366_v60 = vadd.f32 %v1266_v2, %v327_v50  ;;  %v301_v50 = vld [vmem:[%s1261_s7 + $0xe8] sm:$0xff] }
  0x1b   : > { %v367_v61 = vadd.f32 %v1266_v2, %v328_v51  ;;  %v368_v62 = vadd.f32 %v1266_v2, %v329_v52  ;;  %v390_v63 = vmax.f32 %v358_v48, 0.0  ;;  %v332_v5 = vmul.f32 %v1254_v1, %v293_v53  ;;  %v302_v51 = vld [vmem:[%s1261_s7 + $0xf0] sm:$0xff] }
  0x1c   : > { %1137 = vmatmul.mubr.msk.f32.gmra.mrb[2].mxu0 %vm415_vm1, %v385_v30  ;;  %v369_v4 = vadd.f32 %v1266_v2, %v330_v57  ;;  %v333_v6 = vmul.f32 %v1254_v1, %v294_v54  ;;  %v398_v7 = vmax.f32 %v366_v60, 0.0  ;;  %v370_v10 = vadd.f32 %v1266_v2, %v331_v58 }
  0x1d   : > { %1139 = vmatprep.mubr.msk.f32.mxu0 %vm415_vm1, %v386_v35  ;;  %v399_v8 = vmax.f32 %v367_v61, 0.0  ;;  %v400_v9 = vmax.f32 %v368_v62, 0.0  ;;  %v361_v13 = vadd.f32 %v1266_v2, %v322_v49  ;;  %v362_v14 = vadd.f32 %v1266_v2, %v323_v56 }
  0x1e   : > { %v324_v15 = vmul.f32 %v1254_v1, %v285_v0  ;;  %v325_v16 = vmul.f32 %v1254_v1, %v286_v3  ;;  %1157 = vmatprep.mubr.msk.f32.mxu1 %vm415_vm1, %v398_v7  ;;  %v391_v17 = vmax.f32 %v359_v55, 0.0  ;;  %v401_v19 = vmax.f32 %v369_v4, 0.0 }
  0x1f   : > { %1158 = vmatmul.mubr.msk.f32.vlgmr.msra.gmra.mrb[0].mxu1 %vm415_vm1, %v399_v8  ;;  %v371_v20 = vadd.f32 %v1266_v2, %v332_v5  ;;  %v334_v21 = vmul.f32 %v1254_v1, %v295_v11  ;;  %v392_v22 = vmax.f32 %v360_v59, 0.0  ;;  %v402_v23 = vmax.f32 %v370_v10, 0.0  ;;  %v303_v59 = vld [vmem:[%s1261_s7 + $0xf8] sm:$0xff] }
  0x20   : > { %1140 = vmatmul.mubr.msk.f32.gmra.mrb[4].mxu0 %vm415_vm1, %v387_v45  ;;  %1160 = vmatprep.mubr.msk.f32.mxu1 %vm415_vm1, %v400_v9  ;;  %v372_v24 = vadd.f32 %v1266_v2, %v333_v6  ;;  %v335_v25 = vmul.f32 %v1254_v1, %v296_v12  ;;  %v363_v28 = vadd.f32 %v1266_v2, %v324_v15  ;;  %v393_v31 = vmax.f32 %v361_v13, 0.0 }
  0x21   : > { %1142 = vmatprep.mubr.msk.f32.mxu0 %vm415_vm1, %v388_v46  ;;  %v364_v29 = vadd.f32 %v1266_v2, %v325_v16  ;;  %v326_v30 = vmul.f32 %v1254_v1, %v287_v18  ;;  %v403_v32 = vmax.f32 %v371_v20, 0.0  ;;  %v373_v33 = vadd.f32 %v1266_v2, %v334_v21 }
  0x22   : > { %v336_v34 = vmul.f32 %v1254_v1, %v297_v26  ;;  %v394_v35 = vmax.f32 %v362_v14, 0.0  ;;  %v404_v36 = vmax.f32 %v372_v24, 0.0  ;;  %v374_v37 = vadd.f32 %v1266_v2, %v335_v25 }
  0x23   : > { %1161 = vmatmul.mubr.msk.f32.gmra.mrb[2].mxu1 %vm415_vm1, %v401_v19  ;;  %v337_v38 = vmul.f32 %v1254_v1, %v298_v27  ;;  %v395_v41 = vmax.f32 %v363_v28, 0.0  ;;  %v365_v42 = vadd.f32 %v1266_v2, %v326_v30  ;;  %v405_v43 = vmax.f32 %v373_v33, 0.0 }
  0x24   : > { %1143 = vmatmul.mubr.msk.f32.gmra.mrb[6].mxu0 %vm415_vm1, %v389_v47  ;;  %1163 = vmatprep.mubr.msk.f32.mxu1 %vm415_vm1, %v402_v23  ;;  %v375_v44 = vadd.f32 %v1266_v2, %v336_v34  ;;  %v338_v45 = vmul.f32 %v1254_v1, %v299_v39  ;;  %v396_v46 = vmax.f32 %v364_v29, 0.0  ;;  %v406_v47 = vmax.f32 %v374_v37, 0.0 }
  0x25   : > { %1145 = vmatprep.mubr.msk.f32.mxu0 %vm415_vm1, %v390_v63  ;;  %v376_v48 = vadd.f32 %v1266_v2, %v337_v38  ;;  %v339_v49 = vmul.f32 %v1254_v1, %v300_v40  ;;  %v397_v52 = vmax.f32 %v365_v42, 0.0  ;;  %v340_v55 = vmul.f32 %v1254_v1, %v301_v50 }
  0x26   : > { %v407_v53 = vmax.f32 %v375_v44, 0.0  ;;  %v377_v54 = vadd.f32 %v1266_v2, %v338_v45  ;;  %v341_v58 = vmul.f32 %v1254_v1, %v302_v51  ;;  %v342_v62 = vmul.f32 %v1254_v1, %v303_v59 }
  0x27   : > { %1164 = vmatmul.mubr.msk.f32.gmra.mrb[4].mxu1 %vm415_vm1, %v403_v32  ;;  %v408_v56 = vmax.f32 %v376_v48, 0.0  ;;  %v378_v57 = vadd.f32 %v1266_v2, %v339_v49  ;;  %v379_v61 = vadd.f32 %v1266_v2, %v340_v55 }
  0x28   : > { %1146 = vmatmul.mubr.msk.f32.gmra.mrb[8].mxu0 %vm415_vm1, %v391_v17  ;;  %1166 = vmatprep.mubr.msk.f32.mxu1 %vm415_vm1, %v404_v36  ;;  %v409_v60 = vmax.f32 %v377_v54, 0.0  ;;  %v380_v0 = vadd.f32 %v1266_v2, %v341_v58  ;;  %v381_v4 = vadd.f32 %v1266_v2, %v342_v62 }
  0x29   : > { %1148 = vmatprep.mubr.msk.f32.mxu0 %vm415_vm1, %v392_v22  ;;  %v410_v63 = vmax.f32 %v378_v57, 0.0  ;;  %v411_v3 = vmax.f32 %v379_v61, 0.0 }
  0x2a   : > { %v412_v5 = vmax.f32 %v380_v0, 0.0  ;;  %v413_v6 = vmax.f32 %v381_v4, 0.0 }
  0x2b   : > { %1167 = vmatmul.mubr.msk.f32.gmra.mrb[6].mxu1 %vm415_vm1, %v405_v43 }
  0x2c   : > { %1149 = vmatmul.mubr.msk.f32.gmra.mrb[10].mxu0 %vm415_vm1, %v393_v31  ;;  %1169 = vmatprep.mubr.msk.f32.mxu1 %vm415_vm1, %v406_v47 }
  0x2d   : > { %1151 = vmatprep.mubr.msk.f32.mxu0 %vm415_vm1, %v394_v35 }
  0x2f   : > { %1170 = vmatmul.mubr.msk.f32.gmra.mrb[8].mxu1 %vm415_vm1, %v407_v53 }
  0x30   : > { %1152 = vmatmul.mubr.msk.f32.gmra.mrb[12].mxu0 %vm415_vm1, %v395_v41  ;;  %1172 = vmatprep.mubr.msk.f32.mxu1 %vm415_vm1, %v408_v56 }
  0x31   : > { %1154 = vmatprep.mubr.msk.f32.mxu0 %vm415_vm1, %v396_v46 }
  0x33   : > { %1173 = vmatmul.mubr.msk.f32.gmra.mrb[10].mxu1 %vm415_vm1, %v409_v60 }
  0x34   : > { %1155 = vmatmul.mubr.msk.f32.gmra.mrb[14].mxu0 %vm415_vm1, %v397_v52  ;;  %1175 = vmatprep.mubr.msk.f32.mxu1 %vm415_vm1, %v410_v63 }
  0x37   : > { %1176 = vmatmul.mubr.msk.f32.gmra.mrb[12].mxu1 %vm415_vm1, %v411_v3 }
  0x38   : > { %1178 = vmatprep.mubr.msk.f32.mxu1 %vm415_vm1, %v412_v5 }
  0x3b   : > { %1179 = vmatmul.mubr.msk.f32.gmra.mrb[14].mxu1 %vm415_vm1, %v413_v6 }
  0xeb   : > { %v1135_v1 = vpop.f32.mrb[0].mxu0 }
  0xec   : > { %742 = vst.msk [vmem:[%s1401_s12 + $0x8] sm:$0xff] %vm415_vm1, %v1135_v1  ;;  %v774_v2 = vmul.f32 %v1135_v1, %v1135_v1  ;;  %v806_v7 = vsel %vm415_vm1, %v1135_v1, 0.0  ;;  %v582_v8 = vpop.f32.mrb[1].mxu0 }
  0xed   : > { %741 = vst.msk [vmem:[%s1401_s12] sm:$0xff] %vm415_vm1, %v582_v8  ;;  %v773_v9 = vmul.f32 %v582_v8, %v582_v8  ;;  %v805_v10 = vsel %vm415_vm1, %v582_v8, 0.0 }
  0xee   : > { %v877_v11 = vsel %vm415_vm1, %v774_v2, 0.0  ;;  %v807_v12 = vadd.f32 %v806_v7, %v805_v10 }
  0xef   : > { %v876_v13 = vsel %vm415_vm1, %v773_v9, 0.0  ;;  %v1138_v14 = vpop.f32.mrb[2].mxu0 }
  0xf0   : > { %v878_v15 = vadd.f32 %v877_v11, %v876_v13  ;;  %744 = vst.msk [vmem:[%s1401_s12 + $0x18] sm:$0xff] %vm415_vm1, %v1138_v14  ;;  %v592_v16 = vpop.f32.mrb[3].mxu0  ;;  %v776_v17 = vmul.f32 %v1138_v14, %v1138_v14  ;;  %v810_v21 = vsel %vm415_vm1, %v1138_v14, 0.0 }
  0xf1   : > { %743 = vst.msk [vmem:[%s1401_s12 + $0x10] sm:$0xff] %vm415_vm1, %v592_v16  ;;  %v775_v18 = vmul.f32 %v592_v16, %v592_v16  ;;  %v808_v19 = vsel %vm415_vm1, %v592_v16, 0.0 }
  0xf2   : > { %v809_v20 = vadd.f32 %v808_v19, %v807_v12  ;;  %v881_v27 = vsel %vm415_vm1, %v776_v17, 0.0  ;;  %v1426_v36 = vpop.f32.mrb[0].mxu1 }
  0xf3   : > { %v879_v22 = vsel %vm415_vm1, %v775_v18, 0.0  ;;  %v1141_v23 = vpop.f32.mrb[4].mxu0  ;;  %758 = vst.msk [vmem:[%s1401_s12 + $0x88] sm:$0xff] %vm415_vm1, %v1426_v36  ;;  %v1433_v40 = vpop.f32.mrb[1].mxu1 }
  0xf4   : > { %v880_v24 = vadd.f32 %v879_v22, %v878_v15  ;;  %746 = vst.msk [vmem:[%s1401_s12 + $0x28] sm:$0xff] %vm415_vm1, %v1141_v23  ;;  %v602_v25 = vpop.f32.mrb[5].mxu0  ;;  %v811_v26 = vadd.f32 %v810_v21, %v809_v20  ;;  %v778_v28 = vmul.f32 %v1141_v23, %v1141_v23  ;;  %v814_v33 = vsel %vm415_vm1, %v1141_v23, 0.0  ;;  %757 = vst.msk [vmem:[%s1401_s12 + $0x80] sm:$0xff] %vm415_vm1, %v1433_v40 }
  0xf5   : > { %745 = vst.msk [vmem:[%s1401_s12 + $0x20] sm:$0xff] %vm415_vm1, %v602_v25  ;;  %v777_v29 = vmul.f32 %v602_v25, %v602_v25  ;;  %v812_v30 = vsel %vm415_vm1, %v602_v25, 0.0 }
  0xf6   : > { %v813_v31 = vadd.f32 %v812_v30, %v811_v26  ;;  %v882_v32 = vadd.f32 %v881_v27, %v880_v24  ;;  %v885_v41 = vsel %vm415_vm1, %v778_v28, 0.0  ;;  %v1444_v50 = vpop.f32.mrb[2].mxu1 }
  0xf7   : > { %v883_v34 = vsel %vm415_vm1, %v777_v29, 0.0  ;;  %v1144_v35 = vpop.f32.mrb[6].mxu0  ;;  %760 = vst.msk [vmem:[%s1401_s12 + $0x98] sm:$0xff] %vm415_vm1, %v1444_v50  ;;  %v1451_v54 = vpop.f32.mrb[3].mxu1 }
  0xf8   : > { %v884_v37 = vadd.f32 %v883_v34, %v882_v32  ;;  %748 = vst.msk [vmem:[%s1401_s12 + $0x38] sm:$0xff] %vm415_vm1, %v1144_v35  ;;  %v612_v38 = vpop.f32.mrb[7].mxu0  ;;  %v815_v39 = vadd.f32 %v814_v33, %v813_v31  ;;  %v780_v42 = vmul.f32 %v1144_v35, %v1144_v35  ;;  %v818_v47 = vsel %vm415_vm1, %v1144_v35, 0.0  ;;  %759 = vst.msk [vmem:[%s1401_s12 + $0x90] sm:$0xff] %vm415_vm1, %v1451_v54 }
  0xf9   : > { %747 = vst.msk [vmem:[%s1401_s12 + $0x30] sm:$0xff] %vm415_vm1, %v612_v38  ;;  %v779_v43 = vmul.f32 %v612_v38, %v612_v38  ;;  %v816_v44 = vsel %vm415_vm1, %v612_v38, 0.0  ;;  %v789_v32 = vmul.f32 %v1433_v40, %v1433_v40 }
  0xfa   : > { %v817_v45 = vadd.f32 %v816_v44, %v815_v39  ;;  %v886_v46 = vadd.f32 %v885_v41, %v884_v37  ;;  %v889_v55 = vsel %vm415_vm1, %v780_v42, 0.0  ;;  %v1462_v0 = vpop.f32.mrb[4].mxu1  ;;  %v836_v44 = vsel %vm415_vm1, %v1433_v40, 0.0 }
  0xfb   : > { %v887_v48 = vsel %vm415_vm1, %v779_v43, 0.0  ;;  %v1147_v49 = vpop.f32.mrb[8].mxu0  ;;  %762 = vst.msk [vmem:[%s1401_s12 + $0xa8] sm:$0xff] %vm415_vm1, %v1462_v0  ;;  %v1469_v6 = vpop.f32.mrb[5].mxu1  ;;  %v791_v40 = vmul.f32 %v1451_v54, %v1451_v54 }
  0xfc   : > { %v888_v51 = vadd.f32 %v887_v48, %v886_v46  ;;  %750 = vst.msk [vmem:[%s1401_s12 + $0x48] sm:$0xff] %vm415_vm1, %v1147_v49  ;;  %v622_v52 = vpop.f32.mrb[9].mxu0  ;;  %v819_v53 = vadd.f32 %v818_v47, %v817_v45  ;;  %v782_v56 = vmul.f32 %v1147_v49, %v1147_v49  ;;  %v822_v61 = vsel %vm415_vm1, %v1147_v49, 0.0  ;;  %761 = vst.msk [vmem:[%s1401_s12 + $0xa0] sm:$0xff] %vm415_vm1, %v1469_v6 }
  0xfd   : > { %749 = vst.msk [vmem:[%s1401_s12 + $0x40] sm:$0xff] %vm415_vm1, %v622_v52  ;;  %v781_v57 = vmul.f32 %v622_v52, %v622_v52  ;;  %v820_v58 = vsel %vm415_vm1, %v622_v52, 0.0  ;;  %v907_v52 = vsel %vm415_vm1, %v789_v32, 0.0 }
  0xfe   : > { %v821_v59 = vadd.f32 %v820_v58, %v819_v53  ;;  %v890_v60 = vadd.f32 %v889_v55, %v888_v51  ;;  %v893_v1 = vsel %vm415_vm1, %v782_v56, 0.0  ;;  %v1480_v14 = vpop.f32.mrb[6].mxu1  ;;  %v790_v51 = vmul.f32 %v1426_v36, %v1426_v36 }
  0xff   : > { %v891_v62 = vsel %vm415_vm1, %v781_v57, 0.0  ;;  %v1150_v63 = vpop.f32.mrb[10].mxu0  ;;  %764 = vst.msk [vmem:[%s1401_s12 + $0xb8] sm:$0xff] %vm415_vm1, %v1480_v14  ;;  %v1487_v18 = vpop.f32.mrb[7].mxu1  ;;  %v838_v56 = vsel %vm415_vm1, %v1426_v36, 0.0  ;;  %v840_v57 = vsel %vm415_vm1, %v1451_v54, 0.0  ;;  %v793_v36 = vmul.f32 %v1469_v6, %v1469_v6 }
 0x100   : > { %v892_v3 = vadd.f32 %v891_v62, %v890_v60  ;;  %752 = vst.msk [vmem:[%s1401_s12 + $0x58] sm:$0xff] %vm415_vm1, %v1150_v63  ;;  %v632_v4 = vpop.f32.mrb[11].mxu0  ;;  %v823_v5 = vadd.f32 %v822_v61, %v821_v59  ;;  %v784_v2 = vmul.f32 %v1150_v63, %v1150_v63  ;;  %v826_v11 = vsel %vm415_vm1, %v1150_v63, 0.0  ;;  %763 = vst.msk [vmem:[%s1401_s12 + $0xb0] sm:$0xff] %vm415_vm1, %v1487_v18 }
 0x101   : > { %751 = vst.msk [vmem:[%s1401_s12 + $0x50] sm:$0xff] %vm415_vm1, %v632_v4  ;;  %v783_v7 = vmul.f32 %v632_v4, %v632_v4  ;;  %v824_v8 = vsel %vm415_vm1, %v632_v4, 0.0  ;;  %v909_v62 = vsel %vm415_vm1, %v790_v51, 0.0  ;;  %v792_v63 = vmul.f32 %v1444_v50, %v1444_v50 }
 0x102   : > { %v825_v9 = vadd.f32 %v824_v8, %v823_v5  ;;  %v894_v10 = vadd.f32 %v893_v1, %v892_v3  ;;  %v897_v19 = vsel %vm415_vm1, %v784_v2, 0.0  ;;  %v1498_v28 = vpop.f32.mrb[8].mxu1  ;;  %v911_v3 = vsel %vm415_vm1, %v791_v40, 0.0 }
 0x103   : > { %v895_v12 = vsel %vm415_vm1, %v783_v7, 0.0  ;;  %v1153_v13 = vpop.f32.mrb[12].mxu0  ;;  %766 = vst.msk [vmem:[%s1401_s12 + $0xc8] sm:$0xff] %vm415_vm1, %v1498_v28  ;;  %v1507_v33 = vpop.f32.mrb[9].mxu1  ;;  %v842_v5 = vsel %vm415_vm1, %v1444_v50, 0.0  ;;  %v844_v1 = vsel %vm415_vm1, %v1469_v6, 0.0 }
 0x104   : > { %v896_v15 = vadd.f32 %v895_v12, %v894_v10  ;;  %754 = vst.msk [vmem:[%s1401_s12 + $0x68] sm:$0xff] %vm415_vm1, %v1153_v13  ;;  %v642_v16 = vpop.f32.mrb[13].mxu0  ;;  %v827_v17 = vadd.f32 %v826_v11, %v825_v9  ;;  %v786_v20 = vmul.f32 %v1153_v13, %v1153_v13  ;;  %v830_v25 = vsel %vm415_vm1, %v1153_v13, 0.0  ;;  %765 = vst.msk [vmem:[%s1401_s12 + $0xc0] sm:$0xff] %vm415_vm1, %v1507_v33 }
 0x105   : > { %753 = vst.msk [vmem:[%s1401_s12 + $0x60] sm:$0xff] %vm415_vm1, %v642_v16  ;;  %v785_v21 = vmul.f32 %v642_v16, %v642_v16  ;;  %v828_v22 = vsel %vm415_vm1, %v642_v16, 0.0  ;;  %v913_v10 = vsel %vm415_vm1, %v792_v63, 0.0  ;;  %v794_v11 = vmul.f32 %v1462_v0, %v1462_v0 }
 0x106   : > { %v829_v23 = vadd.f32 %v828_v22, %v827_v17  ;;  %v898_v24 = vadd.f32 %v897_v19, %v896_v15  ;;  %v901_v34 = vsel %vm415_vm1, %v786_v20, 0.0  ;;  %v1520_v45 = vpop.f32.mrb[10].mxu1  ;;  %v915_v12 = vsel %vm415_vm1, %v793_v36, 0.0 }
 0x107   : > { %v899_v26 = vsel %vm415_vm1, %v785_v21, 0.0  ;;  %v1156_v27 = vpop.f32.mrb[14].mxu0  ;;  %768 = vst.msk [vmem:[%s1401_s12 + $0xd8] sm:$0xff] %vm415_vm1, %v1520_v45  ;;  %v712_v48 = vpop.f32.mrb[11].mxu1  ;;  %v795_v13 = vmul.f32 %v1487_v18, %v1487_v18  ;;  %v846_v15 = vsel %vm415_vm1, %v1462_v0, 0.0  ;;  %v848_v16 = vsel %vm415_vm1, %v1487_v18, 0.0 }
 0x108   : > { %v900_v29 = vadd.f32 %v899_v26, %v898_v24  ;;  %756 = vst.msk [vmem:[%s1401_s12 + $0x78] sm:$0xff] %vm415_vm1, %v1156_v27  ;;  %v652_v30 = vpop.f32.mrb[15].mxu0  ;;  %v831_v31 = vadd.f32 %v830_v25, %v829_v23  ;;  %v788_v35 = vmul.f32 %v1156_v27, %v1156_v27  ;;  %v834_v42 = vsel %vm415_vm1, %v1156_v27, 0.0  ;;  %767 = vst.msk [vmem:[%s1401_s12 + $0xd0] sm:$0xff] %vm415_vm1, %v712_v48 }
 0x109   : > { %755 = vst.msk [vmem:[%s1401_s12 + $0x70] sm:$0xff] %vm415_vm1, %v652_v30  ;;  %v787_v37 = vmul.f32 %v652_v30, %v652_v30  ;;  %v832_v38 = vsel %vm415_vm1, %v652_v30, 0.0  ;;  %v917_v20 = vsel %vm415_vm1, %v794_v11, 0.0  ;;  %v796_v21 = vmul.f32 %v1480_v14, %v1480_v14 }
 0x10a   : > { %v833_v39 = vadd.f32 %v832_v38, %v831_v31  ;;  %v902_v41 = vadd.f32 %v901_v34, %v900_v29  ;;  %v905_v49 = vsel %vm415_vm1, %v788_v35, 0.0  ;;  %v1537_v58 = vpop.f32.mrb[12].mxu1  ;;  %v919_v22 = vsel %vm415_vm1, %v795_v13, 0.0 }
 0x10b   : > { %v903_v43 = vsel %vm415_vm1, %v787_v37, 0.0  ;;  %770 = vst.msk [vmem:[%s1401_s12 + $0xe8] sm:$0xff] %vm415_vm1, %v1537_v58  ;;  %v722_v61 = vpop.f32.mrb[13].mxu1  ;;  %v797_v23 = vmul.f32 %v1507_v33, %v1507_v33  ;;  %v850_v0 = vsel %vm415_vm1, %v1480_v14, 0.0  ;;  %v852_v18 = vsel %vm415_vm1, %v1507_v33, 0.0 }
 0x10c   : > { %v835_v46 = vadd.f32 %v834_v42, %v833_v39  ;;  %v904_v47 = vadd.f32 %v903_v43, %v902_v41  ;;  %769 = vst.msk [vmem:[%s1401_s12 + $0xe0] sm:$0xff] %vm415_vm1, %v722_v61  ;;  %v921_v29 = vsel %vm415_vm1, %v796_v21, 0.0  ;;  %v798_v30 = vmul.f32 %v1498_v28, %v1498_v28 }
 0x10d   : > { %v923_v31 = vsel %vm415_vm1, %v797_v23, 0.0  ;;  %v799_v32 = vmul.f32 %v712_v48, %v712_v48  ;;  %v854_v37 = vsel %vm415_vm1, %v1498_v28, 0.0  ;;  %v856_v14 = vsel %vm415_vm1, %v712_v48, 0.0 }
 0x10e   : > { %v906_v53 = vadd.f32 %v905_v49, %v904_v47  ;;  %v837_v55 = vadd.f32 %v836_v44, %v835_v46  ;;  %v1180_v2 = vpop.f32.mrb[14].mxu1  ;;  %v925_v33 = vsel %vm415_vm1, %v798_v30, 0.0  ;;  %v800_v41 = vmul.f32 %v1520_v45, %v1520_v45 }
 0x10f   : > { %772 = vst.msk [vmem:[%s1401_s12 + $0xf8] sm:$0xff] %vm415_vm1, %v1180_v2  ;;  %v732_v9 = vpop.f32.mrb[15].mxu1  ;;  %v927_v42 = vsel %vm415_vm1, %v799_v32, 0.0  ;;  %v801_v43 = vmul.f32 %v722_v61, %v722_v61  ;;  %v858_v47 = vsel %vm415_vm1, %v1520_v45, 0.0  ;;  %v860_v49 = vsel %vm415_vm1, %v722_v61, 0.0 }
 0x110   : > { %v908_v59 = vadd.f32 %v907_v52, %v906_v53  ;;  %v839_v60 = vadd.f32 %v838_v56, %v837_v55  ;;  %771 = vst.msk [vmem:[%s1401_s12 + $0xf0] sm:$0xff] %vm415_vm1, %v732_v9  ;;  %v929_v48 = vsel %vm415_vm1, %v800_v41, 0.0  ;;  %v802_v52 = vmul.f32 %v1537_v58, %v1537_v58 }
 0x111   : > { %v931_v40 = vsel %vm415_vm1, %v801_v43, 0.0  ;;  %v803_v53 = vmul.f32 %v732_v9, %v732_v9  ;;  %v864_v45 = vsel %vm415_vm1, %v732_v9, 0.0 }
 0x112   : > { %v841_v54 = vadd.f32 %v840_v57, %v839_v60  ;;  %v910_v4 = vadd.f32 %v909_v62, %v908_v59  ;;  %v862_v57 = vsel %vm415_vm1, %v1537_v58, 0.0  ;;  %v933_v61 = vsel %vm415_vm1, %v802_v52, 0.0 }
 0x113   : > { %v804_v62 = vmul.f32 %v1180_v2, %v1180_v2  ;;  %v935_v63 = vsel %vm415_vm1, %v803_v53, 0.0 }
 0x114   : > { %v912_v7 = vadd.f32 %v911_v3, %v910_v4  ;;  %v843_v8 = vadd.f32 %v842_v5, %v841_v54  ;;  %v866_v54 = vsel %vm415_vm1, %v1180_v2, 0.0 }
 0x116   : > { %v845_v50 = vadd.f32 %v844_v1, %v843_v8  ;;  %v914_v6 = vadd.f32 %v913_v10, %v912_v7  ;;  %v937_v1 = vsel %vm415_vm1, %v804_v62, 0.0 }
 0x118   : > { %v916_v17 = vadd.f32 %v915_v12, %v914_v6  ;;  %v847_v19 = vadd.f32 %v846_v15, %v845_v50 }
 0x11a   : > { %v849_v24 = vadd.f32 %v848_v16, %v847_v19  ;;  %v918_v25 = vadd.f32 %v917_v20, %v916_v17 }
 0x11c   : > { %v920_v26 = vadd.f32 %v919_v22, %v918_v25  ;;  %v851_v27 = vadd.f32 %v850_v0, %v849_v24 }
 0x11e   : > { %v853_v34 = vadd.f32 %v852_v18, %v851_v27  ;;  %v922_v35 = vadd.f32 %v921_v29, %v920_v26 }
 0x120   : > { %v924_v38 = vadd.f32 %v923_v31, %v922_v35  ;;  %v855_v39 = vadd.f32 %v854_v37, %v853_v34 }
 0x122   : > { %v857_v44 = vadd.f32 %v856_v14, %v855_v39  ;;  %v926_v46 = vadd.f32 %v925_v33, %v924_v38 }
 0x124   : > { %v928_v28 = vadd.f32 %v927_v42, %v926_v46  ;;  %v859_v51 = vadd.f32 %v858_v47, %v857_v44 }
 0x126   : > { %v861_v55 = vadd.f32 %v860_v49, %v859_v51  ;;  %v930_v56 = vadd.f32 %v929_v48, %v928_v28 }
 0x128   : > { %v932_v59 = vadd.f32 %v931_v40, %v930_v56  ;;  %v863_v60 = vadd.f32 %v862_v57, %v861_v55 }
 0x12a   : > { %v865_v3 = vadd.f32 %v864_v45, %v863_v60  ;;  %v934_v36 = vadd.f32 %v933_v61, %v932_v59 }
 0x12c   : > { %v867_v4 = vadd.f32 %v866_v54, %v865_v3  ;;  %v936_v5 = vadd.f32 %v935_v63, %v934_v36 }
 0x12e   : > { %v868_v7 = vrot.slane %v867_v4, 4  ;;  %v938_v58 = vadd.f32 %v937_v1, %v936_v5 }
 0x130   : > { %v869_v8 = vadd.f32 %v868_v7, %v867_v4  ;;  %v939_v9 = vrot.slane %v938_v58, 4 }
 0x132   : > { %v870_v10 = vrot.slane %v869_v8, 2  ;;  %v940_v11 = vadd.f32 %v939_v9, %v938_v58 }
 0x134   : > { %v871_v12 = vadd.f32 %v870_v10, %v869_v8  ;;  %v941_v13 = vrot.slane %v940_v11, 2 }
 0x136   : > { %v872_v50 = vrot.slane %v871_v12, 1  ;;  %v942_v6 = vadd.f32 %v941_v13, %v940_v11 }
 0x138   : > { %v873_v2 = vadd.f32 %v872_v50, %v871_v12  ;;  %v943_v15 = vrot.slane %v942_v6, 1 }
 0x13a   : > { %875 = vst.msk [vmem:[%s268_s15] sm:$0x1] %vm874_vm2, %v873_v2  ;;  %v944_v16 = vadd.f32 %v943_v15, %v942_v6 }
 0x13c   : > { %945 = vst.msk [vmem:[%s271_s18] sm:$0x1] %vm874_vm2, %v944_v16 }
 0x13d PF: > { %s17_s21 = sadd.s32 1, %s1197_s21  }
 0x13e   : > { %p14_p5 = scmp.ge.s32.totalorder %s17_s21, 4  }
 0x140   :  { %16 = sbr.rel (!%p14_p5) target bundleno = 1 (0x1), region = 90 }

// kernel: preact_bottleneck_forward.7
= control target key start
LH: loop header
LB: loop body
LE: loop exit
PB: predicated region body
PF: predicated region fallthrough
CT: control target
= control target key end

     0   :  { %10 = vsyncpa [#allocation3], 0  ;;  %s864_s0 = inlined_call_operand.vmem [shape: f32[1,4], index: 0, kind: input, shape index: {}]   ;;  %s865_s1 = inlined_call_operand.vmem [shape: f32[1,4], index: 1, kind: input, shape index: {}]   ;;  %s866_s2 = inlined_call_operand.vmem [shape: f32[128,4], index: 2, kind: input, shape index: {}]   ;;  %s867_s3 = inlined_call_operand.vmem [shape: f32[4,16], index: 3, kind: input, shape index: {}]   ;;  %s868_s4 = inlined_call_operand.vmem [shape: f32[128,16], index: 4, kind: input, shape index: {}]   ;;  %s869_s5 = inlined_call_operand.hbm [shape: f32[128,16], index: 5, kind: output, shape index: {}]  }
   0x1   :  { %12 = vsyncpa [#allocation3 + $0x1], 0  ;;  %s723_s18 = smov 0   ;;  %s725_s19 = smov 0  }
   0x2   :  { %s727_s20 = smov 0   ;;  %s729_s21 = smov 0  }
   0x3 LB: > { %s744_s22 = sadd.s32 4294967295, %s688_s21   ;;  %s534_s23 = sadd.s32 4294967294, %s688_s21   ;;  %s688_s21 = sphi %s729_s21, %s875_s21   ;;  %s684_s20 = sphi %s727_s20, %s874_s20   ;;  %s680_s19 = sphi %s725_s19, %s873_s19   ;;  %s676_s18 = sphi %s723_s18, %s872_s18  }
   0x4   : > { %s748_s24 = sadd.s32 1, %s688_s21   ;;  %s140_s25 = sadd.s32 1, %s684_s20 }
   0x5   : > { %s137_s26 = ssub.s32 %s688_s21, %s748_s24  ;;  %p150_p0 = scmp.ne.s32.totalorder %s684_s20, %s680_s19 }
   0x6   : > { %p138_p1 = scmp.eq.s32.totalorder %s137_s26, 0  ;;  %p151_p2 = scmp.eq.s32.totalorder %s744_s22, 1 }
   0x7   : > { %p156_p3 = scmp.ne.s32.totalorder %s680_s19, %s676_s18  ;;  %p157_p4 = scmp.eq.s32.totalorder %s534_s23, 1 }
   0x8   : > { %s759_s27 = scalar_select %p138_p1, %s684_s20, %s140_s25  }
   0x9   : > { %p761_p5 = por %p151_p2, %p150_p0  ;;  %p765_p6 = por %p157_p4, %p156_p3 }
   0xa   : > { %p537_p7 = scmp.ge.s32.totalorder %s688_s21, 1  ;;  %p202_p8 = scmp.lt.s32.totalorder %s688_s21, 3 }
   0xc   : > { %p203_p9 = pnand %p537_p7, %p202_p8 }
   0xd   : > { %v294_v0 = vld [vmem:[%s867_s3] sm:$0xf] (!%p203_p9)  ;;  %vm328_vm0 = vcmask (!%p203_p9), 1043456   ;;  %s539_s7 = sshll.u32 (!%p203_p9), %s744_s22, 3  ;;  %vm303_vm1 = vcmask (!%p203_p9), 31744   ;;  %s232_s16 = sand.u32 (!%p203_p9), 1, %s680_s19  }
   0xe   : > { %206 = sbr.rel (%p203_p9) target bundleno = 267 (0x10b), region = 40  ;;  %569 = vmatprep.subr.msk.mxu0 (!%p203_p9), %vm328_vm0, %v294_v0  ;;  %583 = vmatprep.subr.msk.mxu1 (!%p203_p9), %vm328_vm0, %v294_v0  ;;  %p236_p10 = scmp.lt.s32.totalorder (!%p203_p9), %s539_s7, 15  ;;  %v543_v1 = vld [vmem:[%s864_s0] ss:$0 sm:$0xff] (!%p203_p9)  ;;  %vm437_vm2 = vcmask (!%p203_p9), 130048  }
   0xf   : > { %570 = vmatpush3.msk.msra.mxu0 (!%p203_p9), %vm328_vm0, %v294_v0  ;;  %584 = vmatpush3.msk.msra.mxu1 (!%p203_p9), %vm328_vm0, %v294_v0  ;;  %v544_v2 = vld [vmem:[%s865_s1] ss:$0 sm:$0xff] (!%p203_p9)  ;;  %s538_s26 = sshll.u32 (!%p203_p9), %s232_s16, 6  ;;  %s559_s30 = sshll.u32 (!%p203_p9), %s744_s22, 10 }
  0x10   : > { %s234_s6 = scalar_lea.vmem (!%p203_p9), [#allocation2], %s538_s26  ;;  %s813_s9 = scalar_lea.hbm (!%p203_p9), %s869_s5, %s559_s30 }
  0x11   : > { %s823_s10 = scalar_lea.sflag (!%p203_p9), [#allocation3], %s232_s16  ;;  %s690_s12 = smov (!%p203_p9), [#allocation2]  }
  0x15   : > { %s877_s7 = smov (!%p236_p10, %s539_s7), 15 }
  0x16   : > { %s540_s8 = sshll.u32 %s877_s7, 3  ;;  %s460_s7 = sshll.u32 %s234_s6, 4  ;;  %s815_s7 = int_to_ptr.vmem [resolvable:$true] %s460_s7 }
  0x17   : > { %s239_s13 = scalar_lea.vmem %s866_s2, %s540_s8  ;;  %s245_s25 = scalar_lea.vmem %s868_s4, %s540_s8 }
  0x18   : > { %v248_v3 = vld [vmem:[%s239_s13] sm:$0xff]  ;;  %v249_v5 = vld [vmem:[%s239_s13 + $0x8] sm:$0xff]  ;;  %v250_v10 = vld [vmem:[%s239_s13 + $0x10] sm:$0xff]  ;;  %s626_s11 = scalar_lea.vmem %s815_s7, 1024 }
  0x19   : > { %v252_v4 = vld [vmem:[%s239_s13 + $0x20] sm:$0xff]  ;;  %v263_v6 = vmul.f32 %v543_v1, %v248_v3  ;;  %v264_v8 = vmul.f32 %v543_v1, %v249_v5  ;;  %v253_v9 = vld [vmem:[%s239_s13 + $0x28] sm:$0xff]  ;;  %v254_v11 = vld [vmem:[%s239_s13 + $0x30] sm:$0xff]  ;;  %v265_v13 = vmul.f32 %v543_v1, %v250_v10  ;;  %p627_p11 = scmp.ne.s32.totalorder %s815_s7, %s626_s11 }
  0x1a   : > { %v267_v7 = vmul.f32 %v543_v1, %v252_v4  ;;  %v268_v12 = vmul.f32 %v543_v1, %v253_v9  ;;  %v269_v14 = vmul.f32 %v543_v1, %v254_v11  ;;  %v251_v15 = vld [vmem:[%s239_s13 + $0x18] sm:$0xff]  ;;  %v296_v35 = vld [vmem:[%s245_s25 + $0x8] sm:$0xff]  ;;  %v295_v37 = vld [vmem:[%s245_s25] sm:$0xff] }
  0x1b   : > { %v255_v16 = vld [vmem:[%s239_s13 + $0x38] sm:$0xff]  ;;  %v278_v17 = vadd.f32 %v544_v2, %v263_v6  ;;  %v279_v19 = vadd.f32 %v544_v2, %v264_v8  ;;  %v266_v20 = vmul.f32 %v543_v1, %v251_v15  ;;  %v280_v22 = vadd.f32 %v544_v2, %v265_v13  ;;  %v300_v36 = vld [vmem:[%s245_s25 + $0x28] sm:$0xff]  ;;  %v299_v38 = vld [vmem:[%s245_s25 + $0x20] sm:$0xff]  ;;  %p628_p12 = pnand %p627_p11, %p761_p5  ;;  %s630_s13 = sshll.u32 %s690_s12, 4  ;;  %s631_s13 = int_to_ptr.vmem [resolvable:$false] %s630_s13 }
  0x1c   : > { %v282_v18 = vadd.f32 %v544_v2, %v267_v7  ;;  %v283_v21 = vadd.f32 %v544_v2, %v268_v12  ;;  %v284_v23 = vadd.f32 %v544_v2, %v269_v14  ;;  %v270_v24 = vmul.f32 %v543_v1, %v255_v16  ;;  %v298_v47 = vld [vmem:[%s245_s25 + $0x18] sm:$0xff]  ;;  %v297_v49 = vld [vmem:[%s245_s25 + $0x10] sm:$0xff]  ;;  %s632_s14 = scalar_lea.vmem %s631_s13, 2048  ;;  %p633_p0 = scmp.lt.s32.totalorder %s815_s7, %s631_s13 }
  0x1d   : > { %v286_v25 = vmax.f32 %v278_v17, 0.0  ;;  %v287_v27 = vmax.f32 %v279_v19, 0.0  ;;  %v281_v28 = vadd.f32 %v544_v2, %v266_v20  ;;  %v288_v30 = vmax.f32 %v280_v22, 0.0  ;;  %v302_v48 = vld [vmem:[%s245_s25 + $0x38] sm:$0xff]  ;;  %v301_v50 = vld [vmem:[%s245_s25 + $0x30] sm:$0xff]  ;;  %p629_p13 = pneg %p628_p12  ;;  %p634_p1 = scmp.lt.s32.totalorder %s632_s14, %s626_s11 }
  0x1e   : > { %v290_v26 = vmax.f32 %v282_v18, 0.0  ;;  %v291_v29 = vmax.f32 %v283_v21, 0.0  ;;  %v292_v31 = vmax.f32 %v284_v23, 0.0  ;;  %v285_v32 = vadd.f32 %v544_v2, %v270_v24 }
  0x1f   : > { %571 = vmatprep.mubr.msk.f32.mxu0 %vm303_vm1, %v286_v25  ;;  %v289_v33 = vmax.f32 %v281_v28, 0.0  ;;  %p635_p2 = por %p634_p1, %p633_p0 }
  0x20   : > { %577 = vmatprep.mubr.msk.f32.mxu1 %vm303_vm1, %v290_v26  ;;  %572 = vmatmul.mubr.msk.f32.vlgmr.msra.gmra.mrb[0].mxu0 %vm303_vm1, %v287_v27  ;;  %v293_v34 = vmax.f32 %v285_v32, 0.0 }
  0x21   : > { %578 = vmatmul.mubr.msk.f32.vlgmr.msra.gmra.mrb[0].mxu1 %vm303_vm1, %v291_v29  ;;  %574 = vmatprep.mubr.msk.f32.mxu0 %vm303_vm1, %v288_v30  ;;  %p636_p3 = pnand %p635_p2, %p629_p13 }
  0x22   : > { %580 = vmatprep.mubr.msk.f32.mxu1 %vm303_vm1, %v292_v31 }
  0x24   : > { %575 = vmatmul.mubr.msk.f32.gmra.mrb[2].mxu0 %vm303_vm1, %v289_v33 }
  0x25   : > { %581 = vmatmul.mubr.msk.f32.gmra.mrb[2].mxu1 %vm303_vm1, %v293_v34 }
  0xf3   : > { %v573_v39 = vpop.f32.mrb[0].mxu0 }
  0xf4   : > { %v579_v40 = vpop.f32.mrb[0].mxu1  ;;  %v404_v41 = vadd.f32 %v573_v39, %v296_v35  ;;  %v398_v43 = vpop.f32.mrb[1].mxu0 }
  0xf5   : > { %v424_v42 = vadd.f32 %v579_v40, %v300_v36  ;;  %v418_v44 = vpop.f32.mrb[1].mxu1  ;;  %v399_v45 = vadd.f32 %v398_v43, %v295_v37 }
  0xf6   : > { %v419_v46 = vadd.f32 %v418_v44, %v299_v38  ;;  %439 = vst.msk [vmem:[%s234_s6 + $0x8] sm:$0xff] %vm437_vm2, %v404_v41 }
  0xf7   : > { %443 = vst.msk [vmem:[%s234_s6 + $0x28] sm:$0xff] %vm437_vm2, %v424_v42  ;;  %438 = vst.msk [vmem:[%s234_s6] sm:$0xff] %vm437_vm2, %v399_v45  ;;  %v576_v51 = vpop.f32.mrb[2].mxu0 }
  0xf8   : > { %442 = vst.msk [vmem:[%s234_s6 + $0x20] sm:$0xff] %vm437_vm2, %v419_v46  ;;  %v582_v52 = vpop.f32.mrb[2].mxu1  ;;  %v414_v53 = vadd.f32 %v576_v51, %v298_v47  ;;  %v408_v55 = vpop.f32.mrb[3].mxu0 }
  0xf9   : > { %v434_v54 = vadd.f32 %v582_v52, %v302_v48  ;;  %v428_v56 = vpop.f32.mrb[3].mxu1  ;;  %v409_v57 = vadd.f32 %v408_v55, %v297_v49 }
  0xfa   : > { %v429_v58 = vadd.f32 %v428_v56, %v301_v50  ;;  %441 = vst.msk [vmem:[%s234_s6 + $0x18] sm:$0xff] %vm437_vm2, %v414_v53 }
  0xfb   : > { %445 = vst.msk [vmem:[%s234_s6 + $0x38] sm:$0xff] %vm437_vm2, %v434_v54  ;;  %440 = vst.msk [vmem:[%s234_s6 + $0x10] sm:$0xff] %vm437_vm2, %v409_v57 }
  0xfc   : > { %444 = vst.msk [vmem:[%s234_s6 + $0x30] sm:$0xff] %vm437_vm2, %v429_v58 }
  0xfd   : > { %639 = shalt.err (!%p636_p3)
}
  0xfe   : > { %s640_s15 = scalar_lea.hbm %s813_s9, 1024  ;;  %s644_s23 = scalar_lea.hbm %s869_s5, 2048 }
  0xff   : > { %p641_p4 = scmp.ne.s32.totalorder %s813_s9, %s640_s15  ;;  %p645_p9 = scmp.lt.u32.totalorder %s813_s9, %s869_s5 }
 0x100   : > { %p646_p10 = scmp.lt.u32.totalorder %s644_s23, %s640_s15  ;;  %p648_p12 = scmp.lt.u32.totalorder %s640_s15, %s813_s9 }
 0x101   : > { %p642_p7 = pnand %p641_p4, %p761_p5 }
 0x102   : > { %p647_p11 = por %p646_p10, %p645_p9 }
 0x103   : > { %p643_p8 = pneg %p642_p7 }
 0x104   : > { %p649_p13 = por %p648_p12, %p647_p11 }
 0x106   : > { %p650_p0 = pnand %p649_p13, %p643_p8 }
 0x108   : > { %653 = shalt.err (!%p650_p0)
}
 0x109   : > { %s691_s30 = smov 128   ;;  %s692_s6 = smov 8  }
 0x10a   : > { %585 = dma.vmem_to_hbm [thread:$0]  (%p761_p5), %s815_s7, 1024, %s813_s9, %s823_s10, %s691_s30, %s691_s30, %s692_s6  }
 0x10b PF: > { %p591_p1 = scmp.ge.s32.totalorder %s688_s21, 2  ;;  %s475_s22 = sand.u32 1, %s676_s18  }
 0x10c   : > { %s476_s8 = scalar_lea.sflag [#allocation3], %s475_s22 }
 0x10d   : > { %p588_p2 = pnand %p591_p1, %p765_p6 }
 0x10f   : > { %671 = dma.done.wait (!%p588_p2), %s476_s8, 1024  }
 0x110   : > { %673 = vsyncadd (!%p588_p2), %s476_s8, 4294966272  ;;  %p15_p3 = scmp.ge.s32.totalorder %s748_s24, 4   ;;  %s872_s18 = smov %s680_s19 }
 0x111   : > { %s873_s19 = smov %s684_s20  ;;  %s874_s20 = smov %s759_s27 }
 0x112   : > { %s875_s21 = smov %s748_s24  ;;  %17 = sbr.rel (!%p15_p3) target bundleno = 3 (0x3), region = 78 }
 0x119   :  { %481 = vsyncpa [#allocation3], 1 }
 0x11a   :  { %483 = vsyncpa [#allocation3 + $0x1], 1 }

</bundles_post_ra>
